<compile_context>
chip_gen: v5e
topology: v5e:2x2
jax: 0.10.0
libtpu: 0.0.40
codegen_flags: <defaults>
</compile_context>

<pallas_src>
import jax
import jax.numpy as jnp
from jax.experimental import pallas as pl
from jax.experimental.pallas import tpu as pltpu  # noqa: F401  (TPU backend)

# ----------------------------- hyper parameters -----------------------------
BATCH = 2
CHANNELS = 4          # sensor channels (last dim of input)
CLASSES = 6
WINDOW = 24           # window_size (time steps)
CONV_KERNELS = 8      # conv_kernels
KSIZE = 5             # conv_kernel_size
LSTM_UNITS = 32       # lstm_units
FINAL_T = WINDOW - (KSIZE - 1) * 4          # final_seq_len = 8
D_IN = CHANNELS * CONV_KERNELS              # LSTM input size = 32


# ------------------------------ fused Pallas kernel --------------------------
def deepconvlstm_kernel(x_ref, w1_ref, b1_ref, w2_ref, b2_ref,
                        w3_ref, b3_ref, w4_ref, b4_ref,
                        wih0_ref, whh0_ref, bl0_ref,
                        w1cat_ref, bl1_ref, wcls_ref, bcls_ref, out_ref):
    """Full forward: 4x(conv+ReLU) -> 2-layer LSTM -> Linear.

    x_ref: (WINDOW*BATCH, CHANNELS), rows ordered t*B + b.
    conv weights are block-diagonal over channels: (K, C*Fin, C*Fout).
    out_ref: (BATCH, CLASSES).
    """
    H = LSTM_UNITS

    # ---- conv stack: 4 x (Conv2d(kernel=(5,1)) + ReLU) as shifted matmuls ---
    def conv_relu(h, wr, br, t_in):
        t_out = t_in - KSIZE + 1
        rows = t_out * BATCH
        acc = jnp.zeros((rows, wr.shape[2]), jnp.float32) + br[...]
        for dt in range(KSIZE):                        # static unroll (5 taps)
            acc = acc + jnp.dot(h[dt * BATCH: dt * BATCH + rows], wr[dt],
                                preferred_element_type=jnp.float32)
        return jnp.maximum(acc, 0.0), t_out

    h, t = conv_relu(x_ref[...], w1_ref, b1_ref, WINDOW)
    h, t = conv_relu(h, w2_ref, b2_ref, t)
    h, t = conv_relu(h, w3_ref, b3_ref, t)
    h, t = conv_relu(h, w4_ref, b4_ref, t)
    # h: (FINAL_T*BATCH, C*F) — already the flattened LSTM input sequence
    # (row t*B+b, feature c*F+f) == torch permute(2,0,3,1).reshape(T',B,-1).

    # ---- layer-0 input projection hoisted out of the recurrence -------------
    xproj = (jnp.dot(h, wih0_ref[...], preferred_element_type=jnp.float32)
             + bl0_ref[...])                           # (FINAL_T*B, 4H)

    whh0 = whh0_ref[...]                               # (H, 4H)
    w1cat = w1cat_ref[...]                             # [wih1; whh1] : (2H, 4H)
    bl1 = bl1_ref[...]                                 # (1, 4H)

    def gates(g, c_prev):
        # PyTorch gate order [i, f, g, o]; one full-lane sigmoid + tanh slice.
        sg = jax.nn.sigmoid(g)                         # (B, 4H)
        gg = jnp.tanh(g[:, 2 * H:3 * H])
        c_new = sg[:, H:2 * H] * c_prev + sg[:, 0:H] * gg
        h_new = sg[:, 3 * H:4 * H] * jnp.tanh(c_new)
        return h_new, c_new

    h0 = jnp.zeros((BATCH, H), jnp.float32)
    c0 = jnp.zeros((BATCH, H), jnp.float32)
    h1 = jnp.zeros((BATCH, H), jnp.float32)
    c1 = jnp.zeros((BATCH, H), jnp.float32)

    for tt in range(FINAL_T):                          # static unroll, 8 steps
        g0 = (xproj[tt * BATCH:(tt + 1) * BATCH]
              + jnp.dot(h0, whh0, preferred_element_type=jnp.float32))
        h0, c0 = gates(g0, c0)
        g1 = (jnp.dot(jnp.concatenate([h0, h1], axis=1), w1cat,
                      preferred_element_type=jnp.float32) + bl1)
        h1, c1 = gates(g1, c1)

    # TODO(synk): nn.Dropout is identity at inference; no RNG dropout applied.
    out_ref[...] = (jnp.dot(h1, wcls_ref[...], preferred_element_type=jnp.float32)
                    + bcls_ref[...])


# ------------------------------ host-side glue -------------------------------
def pack_params(p):
    """Pack raw (torch-layout) params into the kernel's fused/lane-dense forms."""
    def block_diag(w):                                 # (K,Fin,Fout)->(K,C*Fin,C*Fout)
        k, fin, fout = w.shape
        wb = jnp.zeros((k, CHANNELS * fin, CHANNELS * fout), jnp.float32)
        for c in range(CHANNELS):
            wb = wb.at[:, c * fin:(c + 1) * fin, c * fout:(c + 1) * fout].set(w)
        return wb

    def tile_bias(b):                                  # (1,F) -> (1,C*F)
        return jnp.tile(b, (1, CHANNELS))

    return {
        'w1b': block_diag(p['w1']), 'b1b': tile_bias(p['b1']),
        'w2b': block_diag(p['w2']), 'b2b': tile_bias(p['b2']),
        'w3b': block_diag(p['w3']), 'b3b': tile_bias(p['b3']),
        'w4b': block_diag(p['w4']), 'b4b': tile_bias(p['b4']),
        'wih0': p['wih0'], 'whh0': p['whh0'], 'bl0': p['bl0'],
        'w1cat': jnp.concatenate([p['wih1'], p['whh1']], axis=0),  # (2H, 4H)
        'bl1': p['bl1'],
        'wcls': p['wcls'], 'bcls': p['bcls'],
    }


def deepconvlstm_forward(x, pk):
    """x: (B, T, C) float32 -> logits (B, CLASSES)."""
    B, T, C = x.shape
    assert (B, T, C) == (BATCH, WINDOW, CHANNELS)

    # (B, T, C) -> (T, B, C) -> (T*B, C): rows t*B + b, lanes c.
    x_in = jnp.transpose(x, (1, 0, 2)).reshape(T * B, C).astype(jnp.float32)

    return pl.pallas_call(
        deepconvlstm_kernel,
        out_shape=jax.ShapeDtypeStruct((BATCH, CLASSES), jnp.float32),
    )(x_in, pk['w1b'], pk['b1b'], pk['w2b'], pk['b2b'],
      pk['w3b'], pk['b3b'], pk['w4b'], pk['b4b'],
      pk['wih0'], pk['whh0'], pk['bl0'],
      pk['w1cat'], pk['bl1'], pk['wcls'], pk['bcls'])


# --------------------------- pure-JAX reference ------------------------------
def reference_forward(x, p):
    B, T, C = x.shape
    h = x[:, None, :, :].astype(jnp.float32)           # NCHW (B,1,T,C)

    def conv(h, w, b):
        # our w: (K, Fin, Fout) -> OIHW (Fout, Fin, K, 1)
        w_t = jnp.transpose(w, (2, 1, 0))[:, :, :, None]
        y = jax.lax.conv_general_dilated(
            h, w_t, window_strides=(1, 1), padding='VALID',
            dimension_numbers=('NCHW', 'OIHW', 'NCHW'))
        return jax.nn.relu(y + b.reshape(1, -1, 1, 1))

    for w, b in [(p['w1'], p['b1']), (p['w2'], p['b2']),
                 (p['w3'], p['b3']), (p['w4'], p['b4'])]:
        h = conv(h, w, b)

    seq = jnp.transpose(h, (2, 0, 3, 1)).reshape(h.shape[2], B, -1)

    def lstm(xs, wih, whh, b):
        Tn, Bn, _ = xs.shape
        H = whh.shape[0]
        hh = jnp.zeros((Bn, H), jnp.float32)
        cc = jnp.zeros((Bn, H), jnp.float32)
        outs = []
        for t in range(Tn):
            g = xs[t] @ wih + hh @ whh + b
            i = jax.nn.sigmoid(g[:, :H])
            f = jax.nn.sigmoid(g[:, H:2 * H])
            gg = jnp.tanh(g[:, 2 * H:3 * H])
            o = jax.nn.sigmoid(g[:, 3 * H:4 * H])
            cc = f * cc + i * gg
            hh = o * jnp.tanh(cc)
            outs.append(hh)
        return jnp.stack(outs)

    h1 = lstm(seq, p['wih0'], p['whh0'], p['bl0'][0])
    h2 = lstm(h1, p['wih1'], p['whh1'], p['bl1'][0])
    return h2[-1] @ p['wcls'] + p['bcls'][0]


# ---------------------------------- main -------------------------------------
def init_params(key):
    ks = jax.random.split(key, 17)

    def rnd(k, shape, scale):
        return scale * jax.random.normal(k, shape, jnp.float32)

    H4 = 4 * LSTM_UNITS
    return {
        'w1':   rnd(ks[0],  (KSIZE, 1, CONV_KERNELS), 0.3),
        'b1':   rnd(ks[1],  (1, CONV_KERNELS), 0.1),
        'w2':   rnd(ks[2],  (KSIZE, CONV_KERNELS, CONV_KERNELS), 0.2),
        'b2':   rnd(ks[3],  (1, CONV_KERNELS), 0.1),
        'w3':   rnd(ks[4],  (KSIZE, CONV_KERNELS, CONV_KERNELS), 0.2),
        'b3':   rnd(ks[5],  (1, CONV_KERNELS), 0.1),
        'w4':   rnd(ks[6],  (KSIZE, CONV_KERNELS, CONV_KERNELS), 0.2),
        'b4':   rnd(ks[7],  (1, CONV_KERNELS), 0.1),
        # LSTM weights stored pre-transposed: (in, 4H); biases = b_ih + b_hh
        'wih0': rnd(ks[8],  (D_IN, H4), 0.1),
        'whh0': rnd(ks[9],  (LSTM_UNITS, H4), 0.1),
        'bl0':  rnd(ks[10], (1, H4), 0.1),
        'wih1': rnd(ks[11], (LSTM_UNITS, H4), 0.1),
        'whh1': rnd(ks[12], (LSTM_UNITS, H4), 0.1),
        'bl1':  rnd(ks[13], (1, H4), 0.1),
        'wcls': rnd(ks[14], (LSTM_UNITS, CLASSES), 0.2),
        'bcls': rnd(ks[15], (1, CLASSES), 0.1),
        '_xkey': ks[16],
    }


if __name__ == "__main__":
    params = init_params(jax.random.PRNGKey(0))
    x = jax.random.normal(params['_xkey'], (BATCH, WINDOW, CHANNELS), jnp.float32)

    packed = jax.tree_util.tree_map(jax.block_until_ready, pack_params(params))

    out = deepconvlstm_forward(x, packed)
    out = jax.block_until_ready(out)

    ref = jax.block_until_ready(reference_forward(x, params))
    assert out.shape == (BATCH, CLASSES)
    if not jnp.allclose(out, ref, rtol=1e-3, atol=1e-3):
        raise AssertionError(f"mismatch vs reference:\n{out}\n{ref}")

    print("KERNEL_OK")
</pallas_src>

<mosaic_0001>
module attributes {stable_mosaic.version = 11 : i64} {
  func.func @deepconvlstm_kernel(%arg0: memref<48x4xf32, #tpu.memory_space<vmem>>, %arg1: memref<5x4x32xf32, #tpu.memory_space<vmem>>, %arg2: memref<1x32xf32, #tpu.memory_space<vmem>>, %arg3: memref<5x32x32xf32, #tpu.memory_space<vmem>>, %arg4: memref<1x32xf32, #tpu.memory_space<vmem>>, %arg5: memref<5x32x32xf32, #tpu.memory_space<vmem>>, %arg6: memref<1x32xf32, #tpu.memory_space<vmem>>, %arg7: memref<5x32x32xf32, #tpu.memory_space<vmem>>, %arg8: memref<1x32xf32, #tpu.memory_space<vmem>>, %arg9: memref<32x128xf32, #tpu.memory_space<vmem>>, %arg10: memref<32x128xf32, #tpu.memory_space<vmem>>, %arg11: memref<1x128xf32, #tpu.memory_space<vmem>>, %arg12: memref<64x128xf32, #tpu.memory_space<vmem>>, %arg13: memref<1x128xf32, #tpu.memory_space<vmem>>, %arg14: memref<32x6xf32, #tpu.memory_space<vmem>>, %arg15: memref<1x6xf32, #tpu.memory_space<vmem>>, %arg16: memref<2x6xf32, #tpu.memory_space<vmem>>) attributes {dimension_semantics = [], scalar_prefetch = 0 : i64, scratch_operands = 0 : i64, tpu.core_type = #tpu.core_type<tc>} {
    %c0 = arith.constant 0 : index
    %c0_0 = arith.constant 0 : index
    %0 = vector.load %arg0[%c0, %c0_0] : memref<48x4xf32, #tpu.memory_space<vmem>>, vector<48x4xf32>
    %cst = arith.constant 0.000000e+00 : f32
    %1 = vector.broadcast %cst : f32 to vector<40x32xf32>
    %c0_1 = arith.constant 0 : index
    %c0_2 = arith.constant 0 : index
    %2 = vector.load %arg2[%c0_1, %c0_2] : memref<1x32xf32, #tpu.memory_space<vmem>>, vector<1x32xf32>
    %3 = vector.broadcast %2 : vector<1x32xf32> to vector<40x32xf32>
    %4 = arith.addf %1, %3 : vector<40x32xf32>
    %5 = vector.extract_strided_slice %0 {offsets = [0, 0], sizes = [40, 4], strides = [1, 1]} : vector<48x4xf32> to vector<40x4xf32>
    %c0_3 = arith.constant 0 : index
    %c0_4 = arith.constant 0 : index
    %c0_5 = arith.constant 0 : index
    %6 = vector.load %arg1[%c0_3, %c0_4, %c0_5] : memref<5x4x32xf32, #tpu.memory_space<vmem>>, vector<1x4x32xf32>
    %7 = vector.shape_cast %6 : vector<1x4x32xf32> to vector<4x32xf32>
    %cst_6 = arith.constant dense<0.000000e+00> : vector<40x32xf32>
    %8 = tpu.matmul %5, %7, %cst_6 {dimension_numbers = #tpu.dot_dimension_numbers<[1], [0], [0], [1], [0, 0, 1, 1], [], []>} : vector<40x4xf32>, vector<4x32xf32>, vector<40x32xf32> -> vector<40x32xf32>
    %9 = arith.addf %4, %8 : vector<40x32xf32>
    %10 = vector.extract_strided_slice %0 {offsets = [2, 0], sizes = [40, 4], strides = [1, 1]} : vector<48x4xf32> to vector<40x4xf32>
    %c1 = arith.constant 1 : index
    %c0_7 = arith.constant 0 : index
    %c0_8 = arith.constant 0 : index
    %11 = vector.load %arg1[%c1, %c0_7, %c0_8] : memref<5x4x32xf32, #tpu.memory_space<vmem>>, vector<1x4x32xf32>
    %12 = vector.shape_cast %11 : vector<1x4x32xf32> to vector<4x32xf32>
    %cst_9 = arith.constant dense<0.000000e+00> : vector<40x32xf32>
    %13 = tpu.matmul %10, %12, %cst_9 {dimension_numbers = #tpu.dot_dimension_numbers<[1], [0], [0], [1], [0, 0, 1, 1], [], []>} : vector<40x4xf32>, vector<4x32xf32>, vector<40x32xf32> -> vector<40x32xf32>
    %14 = arith.addf %9, %13 : vector<40x32xf32>
    %15 = vector.extract_strided_slice %0 {offsets = [4, 0], sizes = [40, 4], strides = [1, 1]} : vector<48x4xf32> to vector<40x4xf32>
    %c2 = arith.constant 2 : index
    %c0_10 = arith.constant 0 : index
    %c0_11 = arith.constant 0 : index
    %16 = vector.load %arg1[%c2, %c0_10, %c0_11] : memref<5x4x32xf32, #tpu.memory_space<vmem>>, vector<1x4x32xf32>
    %17 = vector.shape_cast %16 : vector<1x4x32xf32> to vector<4x32xf32>
    %cst_12 = arith.constant dense<0.000000e+00> : vector<40x32xf32>
    %18 = tpu.matmul %15, %17, %cst_12 {dimension_numbers = #tpu.dot_dimension_numbers<[1], [0], [0], [1], [0, 0, 1, 1], [], []>} : vector<40x4xf32>, vector<4x32xf32>, vector<40x32xf32> -> vector<40x32xf32>
    %19 = arith.addf %14, %18 : vector<40x32xf32>
    %20 = vector.extract_strided_slice %0 {offsets = [6, 0], sizes = [40, 4], strides = [1, 1]} : vector<48x4xf32> to vector<40x4xf32>
    %c3 = arith.constant 3 : index
    %c0_13 = arith.constant 0 : index
    %c0_14 = arith.constant 0 : index
    %21 = vector.load %arg1[%c3, %c0_13, %c0_14] : memref<5x4x32xf32, #tpu.memory_space<vmem>>, vector<1x4x32xf32>
    %22 = vector.shape_cast %21 : vector<1x4x32xf32> to vector<4x32xf32>
    %cst_15 = arith.constant dense<0.000000e+00> : vector<40x32xf32>
    %23 = tpu.matmul %20, %22, %cst_15 {dimension_numbers = #tpu.dot_dimension_numbers<[1], [0], [0], [1], [0, 0, 1, 1], [], []>} : vector<40x4xf32>, vector<4x32xf32>, vector<40x32xf32> -> vector<40x32xf32>
    %24 = arith.addf %19, %23 : vector<40x32xf32>
    %25 = vector.extract_strided_slice %0 {offsets = [8, 0], sizes = [40, 4], strides = [1, 1]} : vector<48x4xf32> to vector<40x4xf32>
    %c4 = arith.constant 4 : index
    %c0_16 = arith.constant 0 : index
    %c0_17 = arith.constant 0 : index
    %26 = vector.load %arg1[%c4, %c0_16, %c0_17] : memref<5x4x32xf32, #tpu.memory_space<vmem>>, vector<1x4x32xf32>
    %27 = vector.shape_cast %26 : vector<1x4x32xf32> to vector<4x32xf32>
    %cst_18 = arith.constant dense<0.000000e+00> : vector<40x32xf32>
    %28 = tpu.matmul %25, %27, %cst_18 {dimension_numbers = #tpu.dot_dimension_numbers<[1], [0], [0], [1], [0, 0, 1, 1], [], []>} : vector<40x4xf32>, vector<4x32xf32>, vector<40x32xf32> -> vector<40x32xf32>
    %29 = arith.addf %24, %28 : vector<40x32xf32>
    %cst_19 = arith.constant 0.000000e+00 : f32
    %30 = vector.broadcast %cst_19 : f32 to vector<40x32xf32>
    %31 = arith.maximumf %29, %30 : vector<40x32xf32>
    %cst_20 = arith.constant 0.000000e+00 : f32
    %32 = vector.broadcast %cst_20 : f32 to vector<32x32xf32>
    %c0_21 = arith.constant 0 : index
    %c0_22 = arith.constant 0 : index
    %33 = vector.load %arg4[%c0_21, %c0_22] : memref<1x32xf32, #tpu.memory_space<vmem>>, vector<1x32xf32>
    %34 = vector.broadcast %33 : vector<1x32xf32> to vector<32x32xf32>
    %35 = arith.addf %32, %34 : vector<32x32xf32>
    %36 = vector.extract_strided_slice %31 {offsets = [0, 0], sizes = [32, 32], strides = [1, 1]} : vector<40x32xf32> to vector<32x32xf32>
    %c0_23 = arith.constant 0 : index
    %c0_24 = arith.constant 0 : index
    %c0_25 = arith.constant 0 : index
    %37 = vector.load %arg3[%c0_23, %c0_24, %c0_25] : memref<5x32x32xf32, #tpu.memory_space<vmem>>, vector<1x32x32xf32>
    %38 = vector.shape_cast %37 : vector<1x32x32xf32> to vector<32x32xf32>
    %cst_26 = arith.constant dense<0.000000e+00> : vector<32x32xf32>
    %39 = tpu.matmul %36, %38, %cst_26 {dimension_numbers = #tpu.dot_dimension_numbers<[1], [0], [0], [1], [0, 0, 1, 1], [], []>} : vector<32x32xf32>, vector<32x32xf32>, vector<32x32xf32> -> vector<32x32xf32>
    %40 = arith.addf %35, %39 : vector<32x32xf32>
    %41 = vector.extract_strided_slice %31 {offsets = [2, 0], sizes = [32, 32], strides = [1, 1]} : vector<40x32xf32> to vector<32x32xf32>
    %c1_27 = arith.constant 1 : index
    %c0_28 = arith.constant 0 : index
    %c0_29 = arith.constant 0 : index
    %42 = vector.load %arg3[%c1_27, %c0_28, %c0_29] : memref<5x32x32xf32, #tpu.memory_space<vmem>>, vector<1x32x32xf32>
    %43 = vector.shape_cast %42 : vector<1x32x32xf32> to vector<32x32xf32>
    %cst_30 = arith.constant dense<0.000000e+00> : vector<32x32xf32>
    %44 = tpu.matmul %41, %43, %cst_30 {dimension_numbers = #tpu.dot_dimension_numbers<[1], [0], [0], [1], [0, 0, 1, 1], [], []>} : vector<32x32xf32>, vector<32x32xf32>, vector<32x32xf32> -> vector<32x32xf32>
    %45 = arith.addf %40, %44 : vector<32x32xf32>
    %46 = vector.extract_strided_slice %31 {offsets = [4, 0], sizes = [32, 32], strides = [1, 1]} : vector<40x32xf32> to vector<32x32xf32>
    %c2_31 = arith.constant 2 : index
    %c0_32 = arith.constant 0 : index
    %c0_33 = arith.constant 0 : index
    %47 = vector.load %arg3[%c2_31, %c0_32, %c0_33] : memref<5x32x32xf32, #tpu.memory_space<vmem>>, vector<1x32x32xf32>
    %48 = vector.shape_cast %47 : vector<1x32x32xf32> to vector<32x32xf32>
    %cst_34 = arith.constant dense<0.000000e+00> : vector<32x32xf32>
    %49 = tpu.matmul %46, %48, %cst_34 {dimension_numbers = #tpu.dot_dimension_numbers<[1], [0], [0], [1], [0, 0, 1, 1], [], []>} : vector<32x32xf32>, vector<32x32xf32>, vector<32x32xf32> -> vector<32x32xf32>
    %50 = arith.addf %45, %49 : vector<32x32xf32>
    %51 = vector.extract_strided_slice %31 {offsets = [6, 0], sizes = [32, 32], strides = [1, 1]} : vector<40x32xf32> to vector<32x32xf32>
    %c3_35 = arith.constant 3 : index
    %c0_36 = arith.constant 0 : index
    %c0_37 = arith.constant 0 : index
    %52 = vector.load %arg3[%c3_35, %c0_36, %c0_37] : memref<5x32x32xf32, #tpu.memory_space<vmem>>, vector<1x32x32xf32>
    %53 = vector.shape_cast %52 : vector<1x32x32xf32> to vector<32x32xf32>
    %cst_38 = arith.constant dense<0.000000e+00> : vector<32x32xf32>
    %54 = tpu.matmul %51, %53, %cst_38 {dimension_numbers = #tpu.dot_dimension_numbers<[1], [0], [0], [1], [0, 0, 1, 1], [], []>} : vector<32x32xf32>, vector<32x32xf32>, vector<32x32xf32> -> vector<32x32xf32>
    %55 = arith.addf %50, %54 : vector<32x32xf32>
    %56 = vector.extract_strided_slice %31 {offsets = [8, 0], sizes = [32, 32], strides = [1, 1]} : vector<40x32xf32> to vector<32x32xf32>
    %c4_39 = arith.constant 4 : index
    %c0_40 = arith.constant 0 : index
    %c0_41 = arith.constant 0 : index
    %57 = vector.load %arg3[%c4_39, %c0_40, %c0_41] : memref<5x32x32xf32, #tpu.memory_space<vmem>>, vector<1x32x32xf32>
    %58 = vector.shape_cast %57 : vector<1x32x32xf32> to vector<32x32xf32>
    %cst_42 = arith.constant dense<0.000000e+00> : vector<32x32xf32>
    %59 = tpu.matmul %56, %58, %cst_42 {dimension_numbers = #tpu.dot_dimension_numbers<[1], [0], [0], [1], [0, 0, 1, 1], [], []>} : vector<32x32xf32>, vector<32x32xf32>, vector<32x32xf32> -> vector<32x32xf32>
    %60 = arith.addf %55, %59 : vector<32x32xf32>
    %cst_43 = arith.constant 0.000000e+00 : f32
    %61 = vector.broadcast %cst_43 : f32 to vector<32x32xf32>
    %62 = arith.maximumf %60, %61 : vector<32x32xf32>
    %cst_44 = arith.constant 0.000000e+00 : f32
    %63 = vector.broadcast %cst_44 : f32 to vector<24x32xf32>
    %c0_45 = arith.constant 0 : index
    %c0_46 = arith.constant 0 : index
    %64 = vector.load %arg6[%c0_45, %c0_46] : memref<1x32xf32, #tpu.memory_space<vmem>>, vector<1x32xf32>
    %65 = vector.broadcast %64 : vector<1x32xf32> to vector<24x32xf32>
    %66 = arith.addf %63, %65 : vector<24x32xf32>
    %67 = vector.extract_strided_slice %62 {offsets = [0, 0], sizes = [24, 32], strides = [1, 1]} : vector<32x32xf32> to vector<24x32xf32>
    %c0_47 = arith.constant 0 : index
    %c0_48 = arith.constant 0 : index
    %c0_49 = arith.constant 0 : index
    %68 = vector.load %arg5[%c0_47, %c0_48, %c0_49] : memref<5x32x32xf32, #tpu.memory_space<vmem>>, vector<1x32x32xf32>
    %69 = vector.shape_cast %68 : vector<1x32x32xf32> to vector<32x32xf32>
    %cst_50 = arith.constant dense<0.000000e+00> : vector<24x32xf32>
    %70 = tpu.matmul %67, %69, %cst_50 {dimension_numbers = #tpu.dot_dimension_numbers<[1], [0], [0], [1], [0, 0, 1, 1], [], []>} : vector<24x32xf32>, vector<32x32xf32>, vector<24x32xf32> -> vector<24x32xf32>
    %71 = arith.addf %66, %70 : vector<24x32xf32>
    %72 = vector.extract_strided_slice %62 {offsets = [2, 0], sizes = [24, 32], strides = [1, 1]} : vector<32x32xf32> to vector<24x32xf32>
    %c1_51 = arith.constant 1 : index
    %c0_52 = arith.constant 0 : index
    %c0_53 = arith.constant 0 : index
    %73 = vector.load %arg5[%c1_51, %c0_52, %c0_53] : memref<5x32x32xf32, #tpu.memory_space<vmem>>, vector<1x32x32xf32>
    %74 = vector.shape_cast %73 : vector<1x32x32xf32> to vector<32x32xf32>
    %cst_54 = arith.constant dense<0.000000e+00> : vector<24x32xf32>
    %75 = tpu.matmul %72, %74, %cst_54 {dimension_numbers = #tpu.dot_dimension_numbers<[1], [0], [0], [1], [0, 0, 1, 1], [], []>} : vector<24x32xf32>, vector<32x32xf32>, vector<24x32xf32> -> vector<24x32xf32>
    %76 = arith.addf %71, %75 : vector<24x32xf32>
    %77 = vector.extract_strided_slice %62 {offsets = [4, 0], sizes = [24, 32], strides = [1, 1]} : vector<32x32xf32> to vector<24x32xf32>
    %c2_55 = arith.constant 2 : index
    %c0_56 = arith.constant 0 : index
    %c0_57 = arith.constant 0 : index
    %78 = vector.load %arg5[%c2_55, %c0_56, %c0_57] : memref<5x32x32xf32, #tpu.memory_space<vmem>>, vector<1x32x32xf32>
    %79 = vector.shape_cast %78 : vector<1x32x32xf32> to vector<32x32xf32>
    %cst_58 = arith.constant dense<0.000000e+00> : vector<24x32xf32>
    %80 = tpu.matmul %77, %79, %cst_58 {dimension_numbers = #tpu.dot_dimension_numbers<[1], [0], [0], [1], [0, 0, 1, 1], [], []>} : vector<24x32xf32>, vector<32x32xf32>, vector<24x32xf32> -> vector<24x32xf32>
    %81 = arith.addf %76, %80 : vector<24x32xf32>
    %82 = vector.extract_strided_slice %62 {offsets = [6, 0], sizes = [24, 32], strides = [1, 1]} : vector<32x32xf32> to vector<24x32xf32>
    %c3_59 = arith.constant 3 : index
    %c0_60 = arith.constant 0 : index
    %c0_61 = arith.constant 0 : index
    %83 = vector.load %arg5[%c3_59, %c0_60, %c0_61] : memref<5x32x32xf32, #tpu.memory_space<vmem>>, vector<1x32x32xf32>
    %84 = vector.shape_cast %83 : vector<1x32x32xf32> to vector<32x32xf32>
    %cst_62 = arith.constant dense<0.000000e+00> : vector<24x32xf32>
    %85 = tpu.matmul %82, %84, %cst_62 {dimension_numbers = #tpu.dot_dimension_numbers<[1], [0], [0], [1], [0, 0, 1, 1], [], []>} : vector<24x32xf32>, vector<32x32xf32>, vector<24x32xf32> -> vector<24x32xf32>
    %86 = arith.addf %81, %85 : vector<24x32xf32>
    %87 = vector.extract_strided_slice %62 {offsets = [8, 0], sizes = [24, 32], strides = [1, 1]} : vector<32x32xf32> to vector<24x32xf32>
    %c4_63 = arith.constant 4 : index
    %c0_64 = arith.constant 0 : index
    %c0_65 = arith.constant 0 : index
    %88 = vector.load %arg5[%c4_63, %c0_64, %c0_65] : memref<5x32x32xf32, #tpu.memory_space<vmem>>, vector<1x32x32xf32>
    %89 = vector.shape_cast %88 : vector<1x32x32xf32> to vector<32x32xf32>
    %cst_66 = arith.constant dense<0.000000e+00> : vector<24x32xf32>
    %90 = tpu.matmul %87, %89, %cst_66 {dimension_numbers = #tpu.dot_dimension_numbers<[1], [0], [0], [1], [0, 0, 1, 1], [], []>} : vector<24x32xf32>, vector<32x32xf32>, vector<24x32xf32> -> vector<24x32xf32>
    %91 = arith.addf %86, %90 : vector<24x32xf32>
    %cst_67 = arith.constant 0.000000e+00 : f32
    %92 = vector.broadcast %cst_67 : f32 to vector<24x32xf32>
    %93 = arith.maximumf %91, %92 : vector<24x32xf32>
    %cst_68 = arith.constant 0.000000e+00 : f32
    %94 = vector.broadcast %cst_68 : f32 to vector<16x32xf32>
    %c0_69 = arith.constant 0 : index
    %c0_70 = arith.constant 0 : index
    %95 = vector.load %arg8[%c0_69, %c0_70] : memref<1x32xf32, #tpu.memory_space<vmem>>, vector<1x32xf32>
    %96 = vector.broadcast %95 : vector<1x32xf32> to vector<16x32xf32>
    %97 = arith.addf %94, %96 : vector<16x32xf32>
    %98 = vector.extract_strided_slice %93 {offsets = [0, 0], sizes = [16, 32], strides = [1, 1]} : vector<24x32xf32> to vector<16x32xf32>
    %c0_71 = arith.constant 0 : index
    %c0_72 = arith.constant 0 : index
    %c0_73 = arith.constant 0 : index
    %99 = vector.load %arg7[%c0_71, %c0_72, %c0_73] : memref<5x32x32xf32, #tpu.memory_space<vmem>>, vector<1x32x32xf32>
    %100 = vector.shape_cast %99 : vector<1x32x32xf32> to vector<32x32xf32>
    %cst_74 = arith.constant dense<0.000000e+00> : vector<16x32xf32>
    %101 = tpu.matmul %98, %100, %cst_74 {dimension_numbers = #tpu.dot_dimension_numbers<[1], [0], [0], [1], [0, 0, 1, 1], [], []>} : vector<16x32xf32>, vector<32x32xf32>, vector<16x32xf32> -> vector<16x32xf32>
    %102 = arith.addf %97, %101 : vector<16x32xf32>
    %103 = vector.extract_strided_slice %93 {offsets = [2, 0], sizes = [16, 32], strides = [1, 1]} : vector<24x32xf32> to vector<16x32xf32>
    %c1_75 = arith.constant 1 : index
    %c0_76 = arith.constant 0 : index
    %c0_77 = arith.constant 0 : index
    %104 = vector.load %arg7[%c1_75, %c0_76, %c0_77] : memref<5x32x32xf32, #tpu.memory_space<vmem>>, vector<1x32x32xf32>
    %105 = vector.shape_cast %104 : vector<1x32x32xf32> to vector<32x32xf32>
    %cst_78 = arith.constant dense<0.000000e+00> : vector<16x32xf32>
    %106 = tpu.matmul %103, %105, %cst_78 {dimension_numbers = #tpu.dot_dimension_numbers<[1], [0], [0], [1], [0, 0, 1, 1], [], []>} : vector<16x32xf32>, vector<32x32xf32>, vector<16x32xf32> -> vector<16x32xf32>
    %107 = arith.addf %102, %106 : vector<16x32xf32>
    %108 = vector.extract_strided_slice %93 {offsets = [4, 0], sizes = [16, 32], strides = [1, 1]} : vector<24x32xf32> to vector<16x32xf32>
    %c2_79 = arith.constant 2 : index
    %c0_80 = arith.constant 0 : index
    %c0_81 = arith.constant 0 : index
    %109 = vector.load %arg7[%c2_79, %c0_80, %c0_81] : memref<5x32x32xf32, #tpu.memory_space<vmem>>, vector<1x32x32xf32>
    %110 = vector.shape_cast %109 : vector<1x32x32xf32> to vector<32x32xf32>
    %cst_82 = arith.constant dense<0.000000e+00> : vector<16x32xf32>
    %111 = tpu.matmul %108, %110, %cst_82 {dimension_numbers = #tpu.dot_dimension_numbers<[1], [0], [0], [1], [0, 0, 1, 1], [], []>} : vector<16x32xf32>, vector<32x32xf32>, vector<16x32xf32> -> vector<16x32xf32>
    %112 = arith.addf %107, %111 : vector<16x32xf32>
    %113 = vector.extract_strided_slice %93 {offsets = [6, 0], sizes = [16, 32], strides = [1, 1]} : vector<24x32xf32> to vector<16x32xf32>
    %c3_83 = arith.constant 3 : index
    %c0_84 = arith.constant 0 : index
    %c0_85 = arith.constant 0 : index
    %114 = vector.load %arg7[%c3_83, %c0_84, %c0_85] : memref<5x32x32xf32, #tpu.memory_space<vmem>>, vector<1x32x32xf32>
    %115 = vector.shape_cast %114 : vector<1x32x32xf32> to vector<32x32xf32>
    %cst_86 = arith.constant dense<0.000000e+00> : vector<16x32xf32>
    %116 = tpu.matmul %113, %115, %cst_86 {dimension_numbers = #tpu.dot_dimension_numbers<[1], [0], [0], [1], [0, 0, 1, 1], [], []>} : vector<16x32xf32>, vector<32x32xf32>, vector<16x32xf32> -> vector<16x32xf32>
    %117 = arith.addf %112, %116 : vector<16x32xf32>
    %118 = vector.extract_strided_slice %93 {offsets = [8, 0], sizes = [16, 32], strides = [1, 1]} : vector<24x32xf32> to vector<16x32xf32>
    %c4_87 = arith.constant 4 : index
    %c0_88 = arith.constant 0 : index
    %c0_89 = arith.constant 0 : index
    %119 = vector.load %arg7[%c4_87, %c0_88, %c0_89] : memref<5x32x32xf32, #tpu.memory_space<vmem>>, vector<1x32x32xf32>
    %120 = vector.shape_cast %119 : vector<1x32x32xf32> to vector<32x32xf32>
    %cst_90 = arith.constant dense<0.000000e+00> : vector<16x32xf32>
    %121 = tpu.matmul %118, %120, %cst_90 {dimension_numbers = #tpu.dot_dimension_numbers<[1], [0], [0], [1], [0, 0, 1, 1], [], []>} : vector<16x32xf32>, vector<32x32xf32>, vector<16x32xf32> -> vector<16x32xf32>
    %122 = arith.addf %117, %121 : vector<16x32xf32>
    %cst_91 = arith.constant 0.000000e+00 : f32
    %123 = vector.broadcast %cst_91 : f32 to vector<16x32xf32>
    %124 = arith.maximumf %122, %123 : vector<16x32xf32>
    %c0_92 = arith.constant 0 : index
    %c0_93 = arith.constant 0 : index
    %125 = vector.load %arg9[%c0_92, %c0_93] : memref<32x128xf32, #tpu.memory_space<vmem>>, vector<32x128xf32>
    %cst_94 = arith.constant dense<0.000000e+00> : vector<16x128xf32>
    %126 = tpu.matmul %124, %125, %cst_94 {dimension_numbers = #tpu.dot_dimension_numbers<[1], [0], [0], [1], [0, 0, 1, 1], [], []>} : vector<16x32xf32>, vector<32x128xf32>, vector<16x128xf32> -> vector<16x128xf32>
    %c0_95 = arith.constant 0 : index
    %c0_96 = arith.constant 0 : index
    %127 = vector.load %arg11[%c0_95, %c0_96] : memref<1x128xf32, #tpu.memory_space<vmem>>, vector<1x128xf32>
    %128 = vector.broadcast %127 : vector<1x128xf32> to vector<16x128xf32>
    %129 = arith.addf %126, %128 : vector<16x128xf32>
    %c0_97 = arith.constant 0 : index
    %c0_98 = arith.constant 0 : index
    %130 = vector.load %arg10[%c0_97, %c0_98] : memref<32x128xf32, #tpu.memory_space<vmem>>, vector<32x128xf32>
    %c0_99 = arith.constant 0 : index
    %c0_100 = arith.constant 0 : index
    %131 = vector.load %arg12[%c0_99, %c0_100] : memref<64x128xf32, #tpu.memory_space<vmem>>, vector<64x128xf32>
    %c0_101 = arith.constant 0 : index
    %c0_102 = arith.constant 0 : index
    %132 = vector.load %arg13[%c0_101, %c0_102] : memref<1x128xf32, #tpu.memory_space<vmem>>, vector<1x128xf32>
    %cst_103 = arith.constant 0.000000e+00 : f32
    %133 = vector.broadcast %cst_103 : f32 to vector<2x32xf32>
    %cst_104 = arith.constant 0.000000e+00 : f32
    %134 = vector.broadcast %cst_104 : f32 to vector<2x32xf32>
    %cst_105 = arith.constant 0.000000e+00 : f32
    %135 = vector.broadcast %cst_105 : f32 to vector<2x32xf32>
    %cst_106 = arith.constant 0.000000e+00 : f32
    %136 = vector.broadcast %cst_106 : f32 to vector<2x32xf32>
    %137 = vector.extract_strided_slice %129 {offsets = [0, 0], sizes = [2, 128], strides = [1, 1]} : vector<16x128xf32> to vector<2x128xf32>
    %cst_107 = arith.constant dense<0.000000e+00> : vector<2x128xf32>
    %138 = tpu.matmul %133, %130, %cst_107 {dimension_numbers = #tpu.dot_dimension_numbers<[1], [0], [0], [1], [0, 0, 1, 1], [], []>} : vector<2x32xf32>, vector<32x128xf32>, vector<2x128xf32> -> vector<2x128xf32>
    %139 = arith.addf %137, %138 : vector<2x128xf32>
    %140 = arith.negf %139 : vector<2x128xf32>
    %141 = math.exp %140 : vector<2x128xf32>
    %cst_108 = arith.constant 1.000000e+00 : f32
    %142 = vector.broadcast %cst_108 : f32 to vector<2x128xf32>
    %143 = arith.addf %142, %141 : vector<2x128xf32>
    %144 = arith.divf %142, %143 : vector<2x128xf32>
    %145 = vector.extract_strided_slice %139 {offsets = [0, 64], sizes = [2, 32], strides = [1, 1]} : vector<2x128xf32> to vector<2x32xf32>
    %146 = math.tanh %145 : vector<2x32xf32>
    %147 = vector.extract_strided_slice %144 {offsets = [0, 32], sizes = [2, 32], strides = [1, 1]} : vector<2x128xf32> to vector<2x32xf32>
    %148 = arith.mulf %147, %134 : vector<2x32xf32>
    %149 = vector.extract_strided_slice %144 {offsets = [0, 0], sizes = [2, 32], strides = [1, 1]} : vector<2x128xf32> to vector<2x32xf32>
    %150 = arith.mulf %149, %146 : vector<2x32xf32>
    %151 = arith.addf %148, %150 : vector<2x32xf32>
    %152 = vector.extract_strided_slice %144 {offsets = [0, 96], sizes = [2, 32], strides = [1, 1]} : vector<2x128xf32> to vector<2x32xf32>
    %153 = math.tanh %151 : vector<2x32xf32>
    %154 = arith.mulf %152, %153 : vector<2x32xf32>
    %155 = tpu.concatenate %154, %135 in 1 : vector<2x32xf32>, vector<2x32xf32> -> vector<2x64xf32>
    %cst_109 = arith.constant dense<0.000000e+00> : vector<2x128xf32>
    %156 = tpu.matmul %155, %131, %cst_109 {dimension_numbers = #tpu.dot_dimension_numbers<[1], [0], [0], [1], [0, 0, 1, 1], [], []>} : vector<2x64xf32>, vector<64x128xf32>, vector<2x128xf32> -> vector<2x128xf32>
    %157 = vector.broadcast %132 : vector<1x128xf32> to vector<2x128xf32>
    %158 = arith.addf %156, %157 : vector<2x128xf32>
    %159 = arith.negf %158 : vector<2x128xf32>
    %160 = math.exp %159 : vector<2x128xf32>
    %cst_110 = arith.constant 1.000000e+00 : f32
    %161 = vector.broadcast %cst_110 : f32 to vector<2x128xf32>
    %162 = arith.addf %161, %160 : vector<2x128xf32>
    %163 = arith.divf %161, %162 : vector<2x128xf32>
    %164 = vector.extract_strided_slice %158 {offsets = [0, 64], sizes = [2, 32], strides = [1, 1]} : vector<2x128xf32> to vector<2x32xf32>
    %165 = math.tanh %164 : vector<2x32xf32>
    %166 = vector.extract_strided_slice %163 {offsets = [0, 32], sizes = [2, 32], strides = [1, 1]} : vector<2x128xf32> to vector<2x32xf32>
    %167 = arith.mulf %166, %136 : vector<2x32xf32>
    %168 = vector.extract_strided_slice %163 {offsets = [0, 0], sizes = [2, 32], strides = [1, 1]} : vector<2x128xf32> to vector<2x32xf32>
    %169 = arith.mulf %168, %165 : vector<2x32xf32>
    %170 = arith.addf %167, %169 : vector<2x32xf32>
    %171 = vector.extract_strided_slice %163 {offsets = [0, 96], sizes = [2, 32], strides = [1, 1]} : vector<2x128xf32> to vector<2x32xf32>
    %172 = math.tanh %170 : vector<2x32xf32>
    %173 = arith.mulf %171, %172 : vector<2x32xf32>
    %174 = vector.extract_strided_slice %129 {offsets = [2, 0], sizes = [2, 128], strides = [1, 1]} : vector<16x128xf32> to vector<2x128xf32>
    %cst_111 = arith.constant dense<0.000000e+00> : vector<2x128xf32>
    %175 = tpu.matmul %154, %130, %cst_111 {dimension_numbers = #tpu.dot_dimension_numbers<[1], [0], [0], [1], [0, 0, 1, 1], [], []>} : vector<2x32xf32>, vector<32x128xf32>, vector<2x128xf32> -> vector<2x128xf32>
    %176 = arith.addf %174, %175 : vector<2x128xf32>
    %177 = arith.negf %176 : vector<2x128xf32>
    %178 = math.exp %177 : vector<2x128xf32>
    %cst_112 = arith.constant 1.000000e+00 : f32
    %179 = vector.broadcast %cst_112 : f32 to vector<2x128xf32>
    %180 = arith.addf %179, %178 : vector<2x128xf32>
    %181 = arith.divf %179, %180 : vector<2x128xf32>
    %182 = vector.extract_strided_slice %176 {offsets = [0, 64], sizes = [2, 32], strides = [1, 1]} : vector<2x128xf32> to vector<2x32xf32>
    %183 = math.tanh %182 : vector<2x32xf32>
    %184 = vector.extract_strided_slice %181 {offsets = [0, 32], sizes = [2, 32], strides = [1, 1]} : vector<2x128xf32> to vector<2x32xf32>
    %185 = arith.mulf %184, %151 : vector<2x32xf32>
    %186 = vector.extract_strided_slice %181 {offsets = [0, 0], sizes = [2, 32], strides = [1, 1]} : vector<2x128xf32> to vector<2x32xf32>
    %187 = arith.mulf %186, %183 : vector<2x32xf32>
    %188 = arith.addf %185, %187 : vector<2x32xf32>
    %189 = vector.extract_strided_slice %181 {offsets = [0, 96], sizes = [2, 32], strides = [1, 1]} : vector<2x128xf32> to vector<2x32xf32>
    %190 = math.tanh %188 : vector<2x32xf32>
    %191 = arith.mulf %189, %190 : vector<2x32xf32>
    %192 = tpu.concatenate %191, %173 in 1 : vector<2x32xf32>, vector<2x32xf32> -> vector<2x64xf32>
    %cst_113 = arith.constant dense<0.000000e+00> : vector<2x128xf32>
    %193 = tpu.matmul %192, %131, %cst_113 {dimension_numbers = #tpu.dot_dimension_numbers<[1], [0], [0], [1], [0, 0, 1, 1], [], []>} : vector<2x64xf32>, vector<64x128xf32>, vector<2x128xf32> -> vector<2x128xf32>
    %194 = vector.broadcast %132 : vector<1x128xf32> to vector<2x128xf32>
    %195 = arith.addf %193, %194 : vector<2x128xf32>
    %196 = arith.negf %195 : vector<2x128xf32>
    %197 = math.exp %196 : vector<2x128xf32>
    %cst_114 = arith.constant 1.000000e+00 : f32
    %198 = vector.broadcast %cst_114 : f32 to vector<2x128xf32>
    %199 = arith.addf %198, %197 : vector<2x128xf32>
    %200 = arith.divf %198, %199 : vector<2x128xf32>
    %201 = vector.extract_strided_slice %195 {offsets = [0, 64], sizes = [2, 32], strides = [1, 1]} : vector<2x128xf32> to vector<2x32xf32>
    %202 = math.tanh %201 : vector<2x32xf32>
    %203 = vector.extract_strided_slice %200 {offsets = [0, 32], sizes = [2, 32], strides = [1, 1]} : vector<2x128xf32> to vector<2x32xf32>
    %204 = arith.mulf %203, %170 : vector<2x32xf32>
    %205 = vector.extract_strided_slice %200 {offsets = [0, 0], sizes = [2, 32], strides = [1, 1]} : vector<2x128xf32> to vector<2x32xf32>
    %206 = arith.mulf %205, %202 : vector<2x32xf32>
    %207 = arith.addf %204, %206 : vector<2x32xf32>
    %208 = vector.extract_strided_slice %200 {offsets = [0, 96], sizes = [2, 32], strides = [1, 1]} : vector<2x128xf32> to vector<2x32xf32>
    %209 = math.tanh %207 : vector<2x32xf32>
    %210 = arith.mulf %208, %209 : vector<2x32xf32>
    %211 = vector.extract_strided_slice %129 {offsets = [4, 0], sizes = [2, 128], strides = [1, 1]} : vector<16x128xf32> to vector<2x128xf32>
    %cst_115 = arith.constant dense<0.000000e+00> : vector<2x128xf32>
    %212 = tpu.matmul %191, %130, %cst_115 {dimension_numbers = #tpu.dot_dimension_numbers<[1], [0], [0], [1], [0, 0, 1, 1], [], []>} : vector<2x32xf32>, vector<32x128xf32>, vector<2x128xf32> -> vector<2x128xf32>
    %213 = arith.addf %211, %212 : vector<2x128xf32>
    %214 = arith.negf %213 : vector<2x128xf32>
    %215 = math.exp %214 : vector<2x128xf32>
    %cst_116 = arith.constant 1.000000e+00 : f32
    %216 = vector.broadcast %cst_116 : f32 to vector<2x128xf32>
    %217 = arith.addf %216, %215 : vector<2x128xf32>
    %218 = arith.divf %216, %217 : vector<2x128xf32>
    %219 = vector.extract_strided_slice %213 {offsets = [0, 64], sizes = [2, 32], strides = [1, 1]} : vector<2x128xf32> to vector<2x32xf32>
    %220 = math.tanh %219 : vector<2x32xf32>
    %221 = vector.extract_strided_slice %218 {offsets = [0, 32], sizes = [2, 32], strides = [1, 1]} : vector<2x128xf32> to vector<2x32xf32>
    %222 = arith.mulf %221, %188 : vector<2x32xf32>
    %223 = vector.extract_strided_slice %218 {offsets = [0, 0], sizes = [2, 32], strides = [1, 1]} : vector<2x128xf32> to vector<2x32xf32>
    %224 = arith.mulf %223, %220 : vector<2x32xf32>
    %225 = arith.addf %222, %224 : vector<2x32xf32>
    %226 = vector.extract_strided_slice %218 {offsets = [0, 96], sizes = [2, 32], strides = [1, 1]} : vector<2x128xf32> to vector<2x32xf32>
    %227 = math.tanh %225 : vector<2x32xf32>
    %228 = arith.mulf %226, %227 : vector<2x32xf32>
    %229 = tpu.concatenate %228, %210 in 1 : vector<2x32xf32>, vector<2x32xf32> -> vector<2x64xf32>
    %cst_117 = arith.constant dense<0.000000e+00> : vector<2x128xf32>
    %230 = tpu.matmul %229, %131, %cst_117 {dimension_numbers = #tpu.dot_dimension_numbers<[1], [0], [0], [1], [0, 0, 1, 1], [], []>} : vector<2x64xf32>, vector<64x128xf32>, vector<2x128xf32> -> vector<2x128xf32>
    %231 = vector.broadcast %132 : vector<1x128xf32> to vector<2x128xf32>
    %232 = arith.addf %230, %231 : vector<2x128xf32>
    %233 = arith.negf %232 : vector<2x128xf32>
    %234 = math.exp %233 : vector<2x128xf32>
    %cst_118 = arith.constant 1.000000e+00 : f32
    %235 = vector.broadcast %cst_118 : f32 to vector<2x128xf32>
    %236 = arith.addf %235, %234 : vector<2x128xf32>
    %237 = arith.divf %235, %236 : vector<2x128xf32>
    %238 = vector.extract_strided_slice %232 {offsets = [0, 64], sizes = [2, 32], strides = [1, 1]} : vector<2x128xf32> to vector<2x32xf32>
    %239 = math.tanh %238 : vector<2x32xf32>
    %240 = vector.extract_strided_slice %237 {offsets = [0, 32], sizes = [2, 32], strides = [1, 1]} : vector<2x128xf32> to vector<2x32xf32>
    %241 = arith.mulf %240, %207 : vector<2x32xf32>
    %242 = vector.extract_strided_slice %237 {offsets = [0, 0], sizes = [2, 32], strides = [1, 1]} : vector<2x128xf32> to vector<2x32xf32>
    %243 = arith.mulf %242, %239 : vector<2x32xf32>
    %244 = arith.addf %241, %243 : vector<2x32xf32>
    %245 = vector.extract_strided_slice %237 {offsets = [0, 96], sizes = [2, 32], strides = [1, 1]} : vector<2x128xf32> to vector<2x32xf32>
    %246 = math.tanh %244 : vector<2x32xf32>
    %247 = arith.mulf %245, %246 : vector<2x32xf32>
    %248 = vector.extract_strided_slice %129 {offsets = [6, 0], sizes = [2, 128], strides = [1, 1]} : vector<16x128xf32> to vector<2x128xf32>
    %cst_119 = arith.constant dense<0.000000e+00> : vector<2x128xf32>
    %249 = tpu.matmul %228, %130, %cst_119 {dimension_numbers = #tpu.dot_dimension_numbers<[1], [0], [0], [1], [0, 0, 1, 1], [], []>} : vector<2x32xf32>, vector<32x128xf32>, vector<2x128xf32> -> vector<2x128xf32>
    %250 = arith.addf %248, %249 : vector<2x128xf32>
    %251 = arith.negf %250 : vector<2x128xf32>
    %252 = math.exp %251 : vector<2x128xf32>
    %cst_120 = arith.constant 1.000000e+00 : f32
    %253 = vector.broadcast %cst_120 : f32 to vector<2x128xf32>
    %254 = arith.addf %253, %252 : vector<2x128xf32>
    %255 = arith.divf %253, %254 : vector<2x128xf32>
    %256 = vector.extract_strided_slice %250 {offsets = [0, 64], sizes = [2, 32], strides = [1, 1]} : vector<2x128xf32> to vector<2x32xf32>
    %257 = math.tanh %256 : vector<2x32xf32>
    %258 = vector.extract_strided_slice %255 {offsets = [0, 32], sizes = [2, 32], strides = [1, 1]} : vector<2x128xf32> to vector<2x32xf32>
    %259 = arith.mulf %258, %225 : vector<2x32xf32>
    %260 = vector.extract_strided_slice %255 {offsets = [0, 0], sizes = [2, 32], strides = [1, 1]} : vector<2x128xf32> to vector<2x32xf32>
    %261 = arith.mulf %260, %257 : vector<2x32xf32>
    %262 = arith.addf %259, %261 : vector<2x32xf32>
    %263 = vector.extract_strided_slice %255 {offsets = [0, 96], sizes = [2, 32], strides = [1, 1]} : vector<2x128xf32> to vector<2x32xf32>
    %264 = math.tanh %262 : vector<2x32xf32>
    %265 = arith.mulf %263, %264 : vector<2x32xf32>
    %266 = tpu.concatenate %265, %247 in 1 : vector<2x32xf32>, vector<2x32xf32> -> vector<2x64xf32>
    %cst_121 = arith.constant dense<0.000000e+00> : vector<2x128xf32>
    %267 = tpu.matmul %266, %131, %cst_121 {dimension_numbers = #tpu.dot_dimension_numbers<[1], [0], [0], [1], [0, 0, 1, 1], [], []>} : vector<2x64xf32>, vector<64x128xf32>, vector<2x128xf32> -> vector<2x128xf32>
    %268 = vector.broadcast %132 : vector<1x128xf32> to vector<2x128xf32>
    %269 = arith.addf %267, %268 : vector<2x128xf32>
    %270 = arith.negf %269 : vector<2x128xf32>
    %271 = math.exp %270 : vector<2x128xf32>
    %cst_122 = arith.constant 1.000000e+00 : f32
    %272 = vector.broadcast %cst_122 : f32 to vector<2x128xf32>
    %273 = arith.addf %272, %271 : vector<2x128xf32>
    %274 = arith.divf %272, %273 : vector<2x128xf32>
    %275 = vector.extract_strided_slice %269 {offsets = [0, 64], sizes = [2, 32], strides = [1, 1]} : vector<2x128xf32> to vector<2x32xf32>
    %276 = math.tanh %275 : vector<2x32xf32>
    %277 = vector.extract_strided_slice %274 {offsets = [0, 32], sizes = [2, 32], strides = [1, 1]} : vector<2x128xf32> to vector<2x32xf32>
    %278 = arith.mulf %277, %244 : vector<2x32xf32>
    %279 = vector.extract_strided_slice %274 {offsets = [0, 0], sizes = [2, 32], strides = [1, 1]} : vector<2x128xf32> to vector<2x32xf32>
    %280 = arith.mulf %279, %276 : vector<2x32xf32>
    %281 = arith.addf %278, %280 : vector<2x32xf32>
    %282 = vector.extract_strided_slice %274 {offsets = [0, 96], sizes = [2, 32], strides = [1, 1]} : vector<2x128xf32> to vector<2x32xf32>
    %283 = math.tanh %281 : vector<2x32xf32>
    %284 = arith.mulf %282, %283 : vector<2x32xf32>
    %285 = vector.extract_strided_slice %129 {offsets = [8, 0], sizes = [2, 128], strides = [1, 1]} : vector<16x128xf32> to vector<2x128xf32>
    %cst_123 = arith.constant dense<0.000000e+00> : vector<2x128xf32>
    %286 = tpu.matmul %265, %130, %cst_123 {dimension_numbers = #tpu.dot_dimension_numbers<[1], [0], [0], [1], [0, 0, 1, 1], [], []>} : vector<2x32xf32>, vector<32x128xf32>, vector<2x128xf32> -> vector<2x128xf32>
    %287 = arith.addf %285, %286 : vector<2x128xf32>
    %288 = arith.negf %287 : vector<2x128xf32>
    %289 = math.exp %288 : vector<2x128xf32>
    %cst_124 = arith.constant 1.000000e+00 : f32
    %290 = vector.broadcast %cst_124 : f32 to vector<2x128xf32>
    %291 = arith.addf %290, %289 : vector<2x128xf32>
    %292 = arith.divf %290, %291 : vector<2x128xf32>
    %293 = vector.extract_strided_slice %287 {offsets = [0, 64], sizes = [2, 32], strides = [1, 1]} : vector<2x128xf32> to vector<2x32xf32>
    %294 = math.tanh %293 : vector<2x32xf32>
    %295 = vector.extract_strided_slice %292 {offsets = [0, 32], sizes = [2, 32], strides = [1, 1]} : vector<2x128xf32> to vector<2x32xf32>
    %296 = arith.mulf %295, %262 : vector<2x32xf32>
    %297 = vector.extract_strided_slice %292 {offsets = [0, 0], sizes = [2, 32], strides = [1, 1]} : vector<2x128xf32> to vector<2x32xf32>
    %298 = arith.mulf %297, %294 : vector<2x32xf32>
    %299 = arith.addf %296, %298 : vector<2x32xf32>
    %300 = vector.extract_strided_slice %292 {offsets = [0, 96], sizes = [2, 32], strides = [1, 1]} : vector<2x128xf32> to vector<2x32xf32>
    %301 = math.tanh %299 : vector<2x32xf32>
    %302 = arith.mulf %300, %301 : vector<2x32xf32>
    %303 = tpu.concatenate %302, %284 in 1 : vector<2x32xf32>, vector<2x32xf32> -> vector<2x64xf32>
    %cst_125 = arith.constant dense<0.000000e+00> : vector<2x128xf32>
    %304 = tpu.matmul %303, %131, %cst_125 {dimension_numbers = #tpu.dot_dimension_numbers<[1], [0], [0], [1], [0, 0, 1, 1], [], []>} : vector<2x64xf32>, vector<64x128xf32>, vector<2x128xf32> -> vector<2x128xf32>
    %305 = vector.broadcast %132 : vector<1x128xf32> to vector<2x128xf32>
    %306 = arith.addf %304, %305 : vector<2x128xf32>
    %307 = arith.negf %306 : vector<2x128xf32>
    %308 = math.exp %307 : vector<2x128xf32>
    %cst_126 = arith.constant 1.000000e+00 : f32
    %309 = vector.broadcast %cst_126 : f32 to vector<2x128xf32>
    %310 = arith.addf %309, %308 : vector<2x128xf32>
    %311 = arith.divf %309, %310 : vector<2x128xf32>
    %312 = vector.extract_strided_slice %306 {offsets = [0, 64], sizes = [2, 32], strides = [1, 1]} : vector<2x128xf32> to vector<2x32xf32>
    %313 = math.tanh %312 : vector<2x32xf32>
    %314 = vector.extract_strided_slice %311 {offsets = [0, 32], sizes = [2, 32], strides = [1, 1]} : vector<2x128xf32> to vector<2x32xf32>
    %315 = arith.mulf %314, %281 : vector<2x32xf32>
    %316 = vector.extract_strided_slice %311 {offsets = [0, 0], sizes = [2, 32], strides = [1, 1]} : vector<2x128xf32> to vector<2x32xf32>
    %317 = arith.mulf %316, %313 : vector<2x32xf32>
    %318 = arith.addf %315, %317 : vector<2x32xf32>
    %319 = vector.extract_strided_slice %311 {offsets = [0, 96], sizes = [2, 32], strides = [1, 1]} : vector<2x128xf32> to vector<2x32xf32>
    %320 = math.tanh %318 : vector<2x32xf32>
    %321 = arith.mulf %319, %320 : vector<2x32xf32>
    %322 = vector.extract_strided_slice %129 {offsets = [10, 0], sizes = [2, 128], strides = [1, 1]} : vector<16x128xf32> to vector<2x128xf32>
    %cst_127 = arith.constant dense<0.000000e+00> : vector<2x128xf32>
    %323 = tpu.matmul %302, %130, %cst_127 {dimension_numbers = #tpu.dot_dimension_numbers<[1], [0], [0], [1], [0, 0, 1, 1], [], []>} : vector<2x32xf32>, vector<32x128xf32>, vector<2x128xf32> -> vector<2x128xf32>
    %324 = arith.addf %322, %323 : vector<2x128xf32>
    %325 = arith.negf %324 : vector<2x128xf32>
    %326 = math.exp %325 : vector<2x128xf32>
    %cst_128 = arith.constant 1.000000e+00 : f32
    %327 = vector.broadcast %cst_128 : f32 to vector<2x128xf32>
    %328 = arith.addf %327, %326 : vector<2x128xf32>
    %329 = arith.divf %327, %328 : vector<2x128xf32>
    %330 = vector.extract_strided_slice %324 {offsets = [0, 64], sizes = [2, 32], strides = [1, 1]} : vector<2x128xf32> to vector<2x32xf32>
    %331 = math.tanh %330 : vector<2x32xf32>
    %332 = vector.extract_strided_slice %329 {offsets = [0, 32], sizes = [2, 32], strides = [1, 1]} : vector<2x128xf32> to vector<2x32xf32>
    %333 = arith.mulf %332, %299 : vector<2x32xf32>
    %334 = vector.extract_strided_slice %329 {offsets = [0, 0], sizes = [2, 32], strides = [1, 1]} : vector<2x128xf32> to vector<2x32xf32>
    %335 = arith.mulf %334, %331 : vector<2x32xf32>
    %336 = arith.addf %333, %335 : vector<2x32xf32>
    %337 = vector.extract_strided_slice %329 {offsets = [0, 96], sizes = [2, 32], strides = [1, 1]} : vector<2x128xf32> to vector<2x32xf32>
    %338 = math.tanh %336 : vector<2x32xf32>
    %339 = arith.mulf %337, %338 : vector<2x32xf32>
    %340 = tpu.concatenate %339, %321 in 1 : vector<2x32xf32>, vector<2x32xf32> -> vector<2x64xf32>
    %cst_129 = arith.constant dense<0.000000e+00> : vector<2x128xf32>
    %341 = tpu.matmul %340, %131, %cst_129 {dimension_numbers = #tpu.dot_dimension_numbers<[1], [0], [0], [1], [0, 0, 1, 1], [], []>} : vector<2x64xf32>, vector<64x128xf32>, vector<2x128xf32> -> vector<2x128xf32>
    %342 = vector.broadcast %132 : vector<1x128xf32> to vector<2x128xf32>
    %343 = arith.addf %341, %342 : vector<2x128xf32>
    %344 = arith.negf %343 : vector<2x128xf32>
    %345 = math.exp %344 : vector<2x128xf32>
    %cst_130 = arith.constant 1.000000e+00 : f32
    %346 = vector.broadcast %cst_130 : f32 to vector<2x128xf32>
    %347 = arith.addf %346, %345 : vector<2x128xf32>
    %348 = arith.divf %346, %347 : vector<2x128xf32>
    %349 = vector.extract_strided_slice %343 {offsets = [0, 64], sizes = [2, 32], strides = [1, 1]} : vector<2x128xf32> to vector<2x32xf32>
    %350 = math.tanh %349 : vector<2x32xf32>
    %351 = vector.extract_strided_slice %348 {offsets = [0, 32], sizes = [2, 32], strides = [1, 1]} : vector<2x128xf32> to vector<2x32xf32>
    %352 = arith.mulf %351, %318 : vector<2x32xf32>
    %353 = vector.extract_strided_slice %348 {offsets = [0, 0], sizes = [2, 32], strides = [1, 1]} : vector<2x128xf32> to vector<2x32xf32>
    %354 = arith.mulf %353, %350 : vector<2x32xf32>
    %355 = arith.addf %352, %354 : vector<2x32xf32>
    %356 = vector.extract_strided_slice %348 {offsets = [0, 96], sizes = [2, 32], strides = [1, 1]} : vector<2x128xf32> to vector<2x32xf32>
    %357 = math.tanh %355 : vector<2x32xf32>
    %358 = arith.mulf %356, %357 : vector<2x32xf32>
    %359 = vector.extract_strided_slice %129 {offsets = [12, 0], sizes = [2, 128], strides = [1, 1]} : vector<16x128xf32> to vector<2x128xf32>
    %cst_131 = arith.constant dense<0.000000e+00> : vector<2x128xf32>
    %360 = tpu.matmul %339, %130, %cst_131 {dimension_numbers = #tpu.dot_dimension_numbers<[1], [0], [0], [1], [0, 0, 1, 1], [], []>} : vector<2x32xf32>, vector<32x128xf32>, vector<2x128xf32> -> vector<2x128xf32>
    %361 = arith.addf %359, %360 : vector<2x128xf32>
    %362 = arith.negf %361 : vector<2x128xf32>
    %363 = math.exp %362 : vector<2x128xf32>
    %cst_132 = arith.constant 1.000000e+00 : f32
    %364 = vector.broadcast %cst_132 : f32 to vector<2x128xf32>
    %365 = arith.addf %364, %363 : vector<2x128xf32>
    %366 = arith.divf %364, %365 : vector<2x128xf32>
    %367 = vector.extract_strided_slice %361 {offsets = [0, 64], sizes = [2, 32], strides = [1, 1]} : vector<2x128xf32> to vector<2x32xf32>
    %368 = math.tanh %367 : vector<2x32xf32>
    %369 = vector.extract_strided_slice %366 {offsets = [0, 32], sizes = [2, 32], strides = [1, 1]} : vector<2x128xf32> to vector<2x32xf32>
    %370 = arith.mulf %369, %336 : vector<2x32xf32>
    %371 = vector.extract_strided_slice %366 {offsets = [0, 0], sizes = [2, 32], strides = [1, 1]} : vector<2x128xf32> to vector<2x32xf32>
    %372 = arith.mulf %371, %368 : vector<2x32xf32>
    %373 = arith.addf %370, %372 : vector<2x32xf32>
    %374 = vector.extract_strided_slice %366 {offsets = [0, 96], sizes = [2, 32], strides = [1, 1]} : vector<2x128xf32> to vector<2x32xf32>
    %375 = math.tanh %373 : vector<2x32xf32>
    %376 = arith.mulf %374, %375 : vector<2x32xf32>
    %377 = tpu.concatenate %376, %358 in 1 : vector<2x32xf32>, vector<2x32xf32> -> vector<2x64xf32>
    %cst_133 = arith.constant dense<0.000000e+00> : vector<2x128xf32>
    %378 = tpu.matmul %377, %131, %cst_133 {dimension_numbers = #tpu.dot_dimension_numbers<[1], [0], [0], [1], [0, 0, 1, 1], [], []>} : vector<2x64xf32>, vector<64x128xf32>, vector<2x128xf32> -> vector<2x128xf32>
    %379 = vector.broadcast %132 : vector<1x128xf32> to vector<2x128xf32>
    %380 = arith.addf %378, %379 : vector<2x128xf32>
    %381 = arith.negf %380 : vector<2x128xf32>
    %382 = math.exp %381 : vector<2x128xf32>
    %cst_134 = arith.constant 1.000000e+00 : f32
    %383 = vector.broadcast %cst_134 : f32 to vector<2x128xf32>
    %384 = arith.addf %383, %382 : vector<2x128xf32>
    %385 = arith.divf %383, %384 : vector<2x128xf32>
    %386 = vector.extract_strided_slice %380 {offsets = [0, 64], sizes = [2, 32], strides = [1, 1]} : vector<2x128xf32> to vector<2x32xf32>
    %387 = math.tanh %386 : vector<2x32xf32>
    %388 = vector.extract_strided_slice %385 {offsets = [0, 32], sizes = [2, 32], strides = [1, 1]} : vector<2x128xf32> to vector<2x32xf32>
    %389 = arith.mulf %388, %355 : vector<2x32xf32>
    %390 = vector.extract_strided_slice %385 {offsets = [0, 0], sizes = [2, 32], strides = [1, 1]} : vector<2x128xf32> to vector<2x32xf32>
    %391 = arith.mulf %390, %387 : vector<2x32xf32>
    %392 = arith.addf %389, %391 : vector<2x32xf32>
    %393 = vector.extract_strided_slice %385 {offsets = [0, 96], sizes = [2, 32], strides = [1, 1]} : vector<2x128xf32> to vector<2x32xf32>
    %394 = math.tanh %392 : vector<2x32xf32>
    %395 = arith.mulf %393, %394 : vector<2x32xf32>
    %396 = vector.extract_strided_slice %129 {offsets = [14, 0], sizes = [2, 128], strides = [1, 1]} : vector<16x128xf32> to vector<2x128xf32>
    %cst_135 = arith.constant dense<0.000000e+00> : vector<2x128xf32>
    %397 = tpu.matmul %376, %130, %cst_135 {dimension_numbers = #tpu.dot_dimension_numbers<[1], [0], [0], [1], [0, 0, 1, 1], [], []>} : vector<2x32xf32>, vector<32x128xf32>, vector<2x128xf32> -> vector<2x128xf32>
    %398 = arith.addf %396, %397 : vector<2x128xf32>
    %399 = arith.negf %398 : vector<2x128xf32>
    %400 = math.exp %399 : vector<2x128xf32>
    %cst_136 = arith.constant 1.000000e+00 : f32
    %401 = vector.broadcast %cst_136 : f32 to vector<2x128xf32>
    %402 = arith.addf %401, %400 : vector<2x128xf32>
    %403 = arith.divf %401, %402 : vector<2x128xf32>
    %404 = vector.extract_strided_slice %398 {offsets = [0, 64], sizes = [2, 32], strides = [1, 1]} : vector<2x128xf32> to vector<2x32xf32>
    %405 = math.tanh %404 : vector<2x32xf32>
    %406 = vector.extract_strided_slice %403 {offsets = [0, 32], sizes = [2, 32], strides = [1, 1]} : vector<2x128xf32> to vector<2x32xf32>
    %407 = arith.mulf %406, %373 : vector<2x32xf32>
    %408 = vector.extract_strided_slice %403 {offsets = [0, 0], sizes = [2, 32], strides = [1, 1]} : vector<2x128xf32> to vector<2x32xf32>
    %409 = arith.mulf %408, %405 : vector<2x32xf32>
    %410 = arith.addf %407, %409 : vector<2x32xf32>
    %411 = vector.extract_strided_slice %403 {offsets = [0, 96], sizes = [2, 32], strides = [1, 1]} : vector<2x128xf32> to vector<2x32xf32>
    %412 = math.tanh %410 : vector<2x32xf32>
    %413 = arith.mulf %411, %412 : vector<2x32xf32>
    %414 = tpu.concatenate %413, %395 in 1 : vector<2x32xf32>, vector<2x32xf32> -> vector<2x64xf32>
    %cst_137 = arith.constant dense<0.000000e+00> : vector<2x128xf32>
    %415 = tpu.matmul %414, %131, %cst_137 {dimension_numbers = #tpu.dot_dimension_numbers<[1], [0], [0], [1], [0, 0, 1, 1], [], []>} : vector<2x64xf32>, vector<64x128xf32>, vector<2x128xf32> -> vector<2x128xf32>
    %416 = vector.broadcast %132 : vector<1x128xf32> to vector<2x128xf32>
    %417 = arith.addf %415, %416 : vector<2x128xf32>
    %418 = arith.negf %417 : vector<2x128xf32>
    %419 = math.exp %418 : vector<2x128xf32>
    %cst_138 = arith.constant 1.000000e+00 : f32
    %420 = vector.broadcast %cst_138 : f32 to vector<2x128xf32>
    %421 = arith.addf %420, %419 : vector<2x128xf32>
    %422 = arith.divf %420, %421 : vector<2x128xf32>
    %423 = vector.extract_strided_slice %417 {offsets = [0, 64], sizes = [2, 32], strides = [1, 1]} : vector<2x128xf32> to vector<2x32xf32>
    %424 = math.tanh %423 : vector<2x32xf32>
    %425 = vector.extract_strided_slice %422 {offsets = [0, 32], sizes = [2, 32], strides = [1, 1]} : vector<2x128xf32> to vector<2x32xf32>
    %426 = arith.mulf %425, %392 : vector<2x32xf32>
    %427 = vector.extract_strided_slice %422 {offsets = [0, 0], sizes = [2, 32], strides = [1, 1]} : vector<2x128xf32> to vector<2x32xf32>
    %428 = arith.mulf %427, %424 : vector<2x32xf32>
    %429 = arith.addf %426, %428 : vector<2x32xf32>
    %430 = vector.extract_strided_slice %422 {offsets = [0, 96], sizes = [2, 32], strides = [1, 1]} : vector<2x128xf32> to vector<2x32xf32>
    %431 = math.tanh %429 : vector<2x32xf32>
    %432 = arith.mulf %430, %431 : vector<2x32xf32>
    %c0_139 = arith.constant 0 : index
    %c0_140 = arith.constant 0 : index
    %433 = vector.load %arg14[%c0_139, %c0_140] : memref<32x6xf32, #tpu.memory_space<vmem>>, vector<32x6xf32>
    %cst_141 = arith.constant dense<0.000000e+00> : vector<2x6xf32>
    %434 = tpu.matmul %432, %433, %cst_141 {dimension_numbers = #tpu.dot_dimension_numbers<[1], [0], [0], [1], [0, 0, 1, 1], [], []>} : vector<2x32xf32>, vector<32x6xf32>, vector<2x6xf32> -> vector<2x6xf32>
    %c0_142 = arith.constant 0 : index
    %c0_143 = arith.constant 0 : index
    %435 = vector.load %arg15[%c0_142, %c0_143] : memref<1x6xf32, #tpu.memory_space<vmem>>, vector<1x6xf32>
    %436 = vector.broadcast %435 : vector<1x6xf32> to vector<2x6xf32>
    %437 = arith.addf %434, %436 : vector<2x6xf32>
    %c0_144 = arith.constant 0 : index
    %c0_145 = arith.constant 0 : index
    %438 = vector.load %arg16[%c0_144, %c0_145] : memref<2x6xf32, #tpu.memory_space<vmem>>, vector<2x6xf32>
    tpu.vector_store %arg16[%c0_144, %c0_145], %437 {strides = array<i32>} : memref<2x6xf32, #tpu.memory_space<vmem>>, vector<2x6xf32>,
    return
  }
}

</mosaic_0001>

<bundles_post_ra>
// kernel: tpu_custom_call.1
= control target key start
LH: loop header
LB: loop body
LE: loop exit
PB: predicated region body
PF: predicated region fallthrough
CT: control target
= control target key end

     0   :  { %s3384_s0 = inlined_call_operand.vmem [shape: f32[48,4], index: 0, kind: input, shape index: {}]   ;;  %s3385_s1 = inlined_call_operand.vmem [shape: f32[5,4,32], index: 1, kind: input, shape index: {}]   ;;  %s3386_s2 = inlined_call_operand.vmem [shape: f32[1,32], index: 2, kind: input, shape index: {}]   ;;  %s3387_s3 = inlined_call_operand.hbm [shape: f32[5,32,32], index: 3, kind: input, shape index: {}]   ;;  %s3388_s4 = inlined_call_operand.vmem [shape: f32[1,32], index: 4, kind: input, shape index: {}]   ;;  %s3389_s5 = inlined_call_operand.hbm [shape: f32[5,32,32], index: 5, kind: input, shape index: {}]   ;;  %s3390_s6 = inlined_call_operand.vmem [shape: f32[1,32], index: 6, kind: input, shape index: {}]   ;;  %s3391_s7 = inlined_call_operand.hbm [shape: f32[5,32,32], index: 7, kind: input, shape index: {}]   ;;  %s3392_s8 = inlined_call_operand.vmem [shape: f32[1,32], index: 8, kind: input, shape index: {}]   ;;  %s3393_s9 = inlined_call_operand.hbm [shape: f32[32,128], index: 9, kind: input, shape index: {}]   ;;  %s3394_s10 = inlined_call_operand.hbm [shape: f32[32,128], index: 10, kind: input, shape index: {}]   ;;  %s3395_s11 = inlined_call_operand.vmem [shape: f32[1,128], index: 11, kind: input, shape index: {}]   ;;  %s3396_s12 = inlined_call_operand.vmem [shape: f32[64,128], index: 12, kind: input, shape index: {}]   ;;  %s3397_s13 = inlined_call_operand.vmem [shape: f32[1,128], index: 13, kind: input, shape index: {}]   ;;  %s3398_s14 = inlined_call_operand.vmem [shape: f32[32,6], index: 14, kind: input, shape index: {}]   ;;  %s3399_s15 = inlined_call_operand.vmem [shape: f32[1,6], index: 15, kind: input, shape index: {}]   ;;  %s3400_s16 = inlined_call_operand.hbm [shape: f32[2,6], index: 16, kind: output, shape index: {}]  }
   0x1   :  { %3402 = sst [smem:[#allocation16_spill]] %s3384_s0 }
   0x2   :  { %21 = vsyncpa [#allocation3], 0 }
   0x3   :  { %22 = vsyncpa [#allocation6], 0 }
   0x4   :  { %23 = vsyncpa [#allocation9], 0 }
   0x5   :  { %24 = vsyncpa [#allocation4], 0  ;;  %s50_s23 = sshll.u32 %s3389_s5, 4  ;;  %s2742_s24 = smov [#allocation5]   ;;  %s51_s23 = int_to_ptr.hbm [resolvable:$true] %s50_s23 }
   0x6   :  { %s52_s25 = sshll.u32 %s2742_s24, 4  ;;  %s80_s28 = sshll.u32 %s3393_s9, 4  ;;  %s53_s25 = int_to_ptr.vmem [resolvable:$true] %s52_s25  ;;  %s81_s28 = int_to_ptr.hbm [resolvable:$true] %s80_s28 }
   0x7   :  { %s2743_s29 = smov 128   ;;  %s2744_s30 = smov 8  }
   0x8   :  { %58 = dma.hbm_to_vmem [thread:$0]  %s51_s23, 2560, %s53_s25, [#allocation6], %s2743_s29, %s2743_s29, %s2744_s30  }
   0x9   :  { %s2745_s0 = smov [#allocation8]   ;;  %s35_s20 = sshll.u32 %s3387_s3, 4  ;;  %s36_s20 = int_to_ptr.hbm [resolvable:$true] %s35_s20 }
   0xa   :  { %s82_s17 = sshll.u32 %s2745_s0, 4  ;;  %s65_s22 = sshll.u32 %s3391_s7, 4  ;;  %s83_s17 = int_to_ptr.vmem [resolvable:$true] %s82_s17  ;;  %s66_s22 = int_to_ptr.hbm [resolvable:$true] %s65_s22 }
   0xb   :  { %88 = dma.hbm_to_vmem [thread:$0]  %s81_s28, 512, %s83_s17, [#allocation9], %s2743_s29, %s2743_s29, %s2744_s30  }
   0xc   :  { %s2746_s24 = smov [#allocation2]   ;;  %s2747_s9 = smov [#allocation7]  }
   0xd   :  { %s37_s26 = sshll.u32 %s2746_s24, 4  ;;  %s67_s23 = sshll.u32 %s2747_s9, 4  ;;  %s38_s26 = int_to_ptr.vmem [resolvable:$true] %s37_s26  ;;  %s68_s23 = int_to_ptr.vmem [resolvable:$true] %s67_s23 }
   0xe   :  { %43 = dma.hbm_to_vmem [thread:$0]  %s36_s20, 2560, %s38_s26, [#allocation3], %s2743_s29, %s2743_s29, %s2744_s30  }
   0xf   :  { %s93_s0 = sshll.u32 %s3394_s10, 4  ;;  %s2748_s3 = smov [#allocation10]   ;;  %s94_s0 = int_to_ptr.hbm [resolvable:$true] %s93_s0 }
  0x10   :  { %73 = dma.hbm_to_vmem [thread:$0]  %s66_s22, 2560, %s68_s23, [#allocation6], %s2743_s29, %s2743_s29, %s2744_s30  }
  0x11   :  { %s95_s28 = sshll.u32 %s2748_s3, 4  ;;  %s96_s28 = int_to_ptr.vmem [resolvable:$true] %s95_s28 }
  0x12   :  { %101 = dma.hbm_to_vmem [thread:$0]  %s94_s0, 512, %s96_s28, [#allocation9], %s2743_s29, %s2743_s29, %s2744_s30  }
  0x13   :  { %2734 = dma.done.wait [#allocation3], 2560  }
  0x14   :  { %2735 = vsyncadd [#allocation3], 4294964736 }
  0x15   :  { %2736 = dma.done.wait [#allocation6], 5120  }
  0x16   :  { %2737 = vsyncadd [#allocation6], 4294962176 }
  0x17   :  { %2738 = dma.done.wait [#allocation9], 1024  }
  0x18   :  { %2739 = vsyncadd [#allocation9], 4294966272  ;;  %vm160_vm0 = vcmask 1043456   ;;  %vm144_vm1 = vcmask 31744   ;;  %vm204_vm2 = vcmask 1045504   ;;  %s3403_s19 = sld [smem:[#allocation16_spill]] }
  0x19   :  { %v143_v0 = vld [vmem:[%s3385_s1] sm:$0xf]  ;;  %v2357_v2 = vld [vmem:[%s3385_s1 + $0x10] sm:$0xf]  ;;  %vm331_vm3 = vcmask 1041408   ;;  %v501_v44 = vld [vmem:[#allocation2 + $0x38] sm:$0xff] }
  0x1a   :  { %2330 = vmatpush.msk.msra.mxu0 %vm160_vm0, %v143_v0  ;;  %v2336_v3 = vld [vmem:[%s3385_s1 + $0x4] sm:$0xf]  ;;  %v2343_v4 = vld [vmem:[%s3385_s1 + $0x8] sm:$0xf]  ;;  %v2350_v10 = vld [vmem:[%s3385_s1 + $0xc] sm:$0xf] }
  0x1b   :  { %2337 = vmatpush.msk.msra.mxu1 %vm160_vm0, %v2336_v3  ;;  %2344 = vmatpush.msk.msra.mxu2 %vm160_vm0, %v2343_v4  ;;  %v450_v45 = vld [vmem:[#allocation2 + $0x18] sm:$0xff]  ;;  %v500_v46 = vld [vmem:[#allocation2 + $0x30] sm:$0xff]  ;;  %v499_v49 = vld [vmem:[#allocation2 + $0x28] sm:$0xff]  ;;  %vm451_vm4 = vcmask 261120   ;;  %s2750_s30 = smov 64   ;;  %vm1246_vm9 = vcmask 523264  }
  0x1c   :  { %2358 = vmatpush.msk.msrb.mxu0 %vm160_vm0, %v2357_v2  ;;  %2351 = vmatpush.msk.msra.mxu3 %vm160_vm0, %v2350_v10  ;;  %v449_v47 = vld [vmem:[#allocation2 + $0x10] sm:$0xff]  ;;  %v448_v51 = vld [vmem:[#allocation2 + $0x8] sm:$0xff]  ;;  %v447_v52 = vld [vmem:[#allocation2] sm:$0xff]  ;;  %s2752_s26 = smov [#allocation11]   ;;  %s2318_s27 = sshll.u32 %s3400_s16, 4  ;;  %s2319_s27 = int_to_ptr.hbm [resolvable:$true] %s2318_s27 }
  0x1d   :  { %532 = vmatpush.msrb.mxu2 %v501_v44  ;;  %476 = vmatpush.msrb.mxu1 %v450_v45  ;;  %v557_v53 = vld [vmem:[#allocation2 + $0x58] sm:$0xff]  ;;  %v498_v54 = vld [vmem:[#allocation2 + $0x20] sm:$0xff]  ;;  %v556_v56 = vld [vmem:[#allocation2 + $0x50] sm:$0xff]  ;;  %s2316_s9 = sshll.u32 %s2752_s26, 4  ;;  %s2317_s9 = int_to_ptr.vmem [resolvable:$true] %s2316_s9 }
  0x1e   :  { %v132_v1 = vld [vmem:[%s3403_s19] sm:$0xff]  ;;  %v2872_v5 = vld [vmem:[%s3403_s19 + $0x8] sm:$0xff]  ;;  %v134_v13 = vld [vmem:[%s3403_s19 + $0x10] sm:$0xff]  ;;  %587 = vmatpush.msrb.mxu3 %v557_v53 }
  0x1f   :  { %v205_v6 = vrot.slane %v132_v1, 2  ;;  %2331 = vmatmul.msk.f32.vlgmr.msra.gmra.mxu0 %vm144_vm1, %v132_v1  ;;  %v206_v7 = vrot.slane %v2872_v5, 2  ;;  %v268_v8 = vrot.slane %v132_v1, 4  ;;  %v269_v9 = vrot.slane %v2872_v5, 4  ;;  %v135_v23 = vld [vmem:[%s3403_s19 + $0x18] sm:$0xff]  ;;  %v136_v30 = vld [vmem:[%s3403_s19 + $0x20] sm:$0xff]  ;;  %533 = vmatpush.msrb.mxu2 %v500_v46 }
  0x20   :  { %v332_v11 = vrot.slane %v132_v1, 6  ;;  %v333_v12 = vrot.slane %v2872_v5, 6  ;;  %v208_v17 = vrot.slane %v134_v13, 2  ;;  %v271_v18 = vrot.slane %v134_v13, 4  ;;  %v137_v37 = vld [vmem:[%s3403_s19 + $0x28] sm:$0xff]  ;;  %477 = vmatpush.msrb.mxu1 %v449_v47  ;;  %588 = vmatpush.msrb.mxu3 %v556_v56  ;;  %v554_v58 = vld [vmem:[#allocation2 + $0x40] sm:$0xff] }
  0x21   :  { %v207_v14 = vsel %vm204_vm2, %v205_v6, %v206_v7  ;;  %v270_v15 = vsel %vm160_vm0, %v268_v8, %v269_v9  ;;  %v335_v19 = vrot.slane %v134_v13, 6  ;;  %v210_v24 = vrot.slane %v135_v23, 2  ;;  %534 = vmatpush.msrb.mxu2 %v499_v49  ;;  %v555_v57 = vld [vmem:[#allocation2 + $0x48] sm:$0xff]  ;;  %v2941_v62 = vld [vmem:[%s3386_s2] ss:$0 sm:$0xff]  ;;  %v667_v63 = vld [vmem:[#allocation2 + $0x98] sm:$0xff] }
  0x22   :  { %2338 = vmatmul.msk.f32.vlgmr.msra.gmra.mxu1 %vm144_vm1, %v207_v14  ;;  %2345 = vmatmul.msk.f32.vlgmr.msra.gmra.mxu2 %vm144_vm1, %v270_v15  ;;  %v334_v16 = vsel %vm331_vm3, %v332_v11, %v333_v12  ;;  %v209_v20 = vsel %vm204_vm2, %v206_v7, %v208_v17  ;;  %v272_v21 = vsel %vm160_vm0, %v269_v9, %v271_v18  ;;  %v273_v25 = vrot.slane %v135_v23, 4  ;;  %v612_v0 = vld [vmem:[#allocation2 + $0x78] sm:$0xff]  ;;  %v666_v8 = vld [vmem:[#allocation2 + $0x90] sm:$0xff] }
  0x23   :  { %2352 = vmatmul.msk.f32.vlgmr.msra.gmra.mxu3 %vm144_vm1, %v334_v16  ;;  %v336_v22 = vsel %vm331_vm3, %v333_v12, %v335_v19  ;;  %v337_v26 = vrot.slane %v135_v23, 6  ;;  %v211_v27 = vsel %vm204_vm2, %v208_v17, %v210_v24  ;;  %v212_v31 = vrot.slane %v136_v30, 2  ;;  %478 = vmatpush.msrb.mxu1 %v448_v51  ;;  %v611_v9 = vld [vmem:[#allocation2 + $0x70] sm:$0xff]  ;;  %v610_v17 = vld [vmem:[#allocation2 + $0x68] sm:$0xff] }
  0x24   :  { %v274_v28 = vsel %vm160_vm0, %v271_v18, %v273_v25  ;;  %v275_v32 = vrot.slane %v136_v30, 4  ;;  %v339_v33 = vrot.slane %v136_v30, 6  ;;  %v214_v38 = vrot.slane %v137_v37, 2  ;;  %535 = vmatpush.msrb.mxu2 %v498_v54  ;;  %589 = vmatpush.msrb.mxu3 %v555_v57 }
  0x25   :  { %v338_v29 = vsel %vm331_vm3, %v335_v19, %v337_v26  ;;  %v213_v34 = vsel %vm204_vm2, %v210_v24, %v212_v31  ;;  %v277_v39 = vrot.slane %v137_v37, 4  ;;  %v341_v40 = vrot.slane %v137_v37, 6  ;;  %479 = vmatpush.msrb.mxu1 %v447_v52 }
  0x26   :  { %v276_v35 = vsel %vm160_vm0, %v273_v25, %v275_v32  ;;  %v340_v36 = vsel %vm331_vm3, %v337_v26, %v339_v33  ;;  %v215_v41 = vsel %vm204_vm2, %v212_v31, %v214_v38  ;;  %590 = vmatpush.msrb.mxu3 %v554_v58  ;;  %682 = vmatpush.msra.mxu2 %v667_v63 }
  0x27   :  { %2332 = vmatmul.msk.f32.gmra.mxu0 %vm144_vm1, %v2872_v5  ;;  %v278_v42 = vsel %vm160_vm0, %v275_v32, %v277_v39  ;;  %v342_v43 = vsel %vm331_vm3, %v339_v33, %v341_v40  ;;  %642 = vmatpush.msra.mxu1 %v612_v0 }
  0x28   :  { %683 = vmatpush.msra.mxu2 %v666_v8 }
  0x29   :  { %643 = vmatpush.msra.mxu1 %v611_v9 }
  0x2a   :  { %2339 = vmatmul.msk.f32.gmra.mxu1 %vm144_vm1, %v209_v20  ;;  %2346 = vmatmul.msk.f32.gmra.mxu2 %vm144_vm1, %v272_v21  ;;  %v665_v20 = vld [vmem:[#allocation2 + $0x88] sm:$0xff]  ;;  %v609_v21 = vld [vmem:[#allocation2 + $0x60] sm:$0xff] }
  0x2b   :  { %2353 = vmatmul.msk.f32.gmra.mxu3 %vm144_vm1, %v336_v22  ;;  %644 = vmatpush.msra.mxu1 %v610_v17 }
  0x2c   :  { %684 = vmatpush.msra.mxu2 %v665_v20  ;;  %v758_v20 = vld [vmem:[#allocation5 + $0x38] sm:$0xff] }
  0x2d   :  { %645 = vmatpush.msra.mxu1 %v609_v21  ;;  %785 = vmatpush.msra.mxu0 %v758_v20 }
  0x2f   :  { %2333 = vmatmul.msk.f32.gmra.mxu0 %vm144_vm1, %v134_v13 }
  0x32   :  { %2340 = vmatmul.msk.f32.gmra.mxu1 %vm144_vm1, %v211_v27  ;;  %2347 = vmatmul.msk.f32.gmra.mxu2 %vm144_vm1, %v274_v28  ;;  %v664_v27 = vld [vmem:[#allocation2 + $0x80] sm:$0xff] }
  0x33   :  { %2354 = vmatmul.msk.f32.gmra.mxu3 %vm144_vm1, %v338_v29  ;;  %685 = vmatpush.msra.mxu2 %v664_v27 }
  0x37   :  { %2334 = vmatmul.msk.f32.gmra.mxu0 %vm144_vm1, %v135_v23 }
  0x3a   :  { %2341 = vmatmul.msk.f32.gmra.mxu1 %vm144_vm1, %v213_v34  ;;  %2348 = vmatmul.msk.f32.gmra.mxu2 %vm144_vm1, %v276_v35 }
  0x3b   :  { %2355 = vmatmul.msk.f32.gmra.mxu3 %vm144_vm1, %v340_v36 }
  0x3f   :  { %2335 = vmatmul.msk.f32.gmra.mxu0 %vm144_vm1, %v136_v30 }
  0x42   :  { %2342 = vmatmul.msk.f32.gmra.mxu1 %vm144_vm1, %v215_v41  ;;  %2349 = vmatmul.msk.f32.gmra.mxu2 %vm144_vm1, %v278_v42 }
  0x43   :  { %2356 = vmatmul.msk.f32.gmra.mxu3 %vm144_vm1, %v342_v43 }
  0x47   :  { %2359 = vmatmul.msk.f32.vlgmr.msrb.gmra.mxu0 %vm144_vm1, %v2872_v5 }
  0x4f   :  { %2360 = vmatmul.msk.f32.gmra.mxu0 %vm144_vm1, %v134_v13 }
  0x57   :  { %2361 = vmatmul.msk.f32.gmra.mxu0 %vm144_vm1, %v135_v23 }
  0x5f   :  { %2362 = vmatmul.msk.f32.gmra.mxu0 %vm144_vm1, %v136_v30 }
  0x67   :  { %2363 = vmatmul.msk.f32.gmra.mxu0 %vm144_vm1, %v137_v37 }
  0x9c   :  { %v181_v48 = vpop.f32.mrf.mxu0 }
  0x9d   :  { %v196_v2 = vadd.f32 %v2941_v62, %v181_v48 }
  0x9f   :  { %v246_v59 = vpop.f32.mrf.mxu1 }
  0xa0   :  { %v261_v5 = vadd.f32 %v246_v59, %v196_v2 }
  0xa4   :  { %v184_v50 = vpop.f32.mrf.mxu0 }
  0xa5   :  { %v309_v60 = vpop.f32.mrf.mxu2  ;;  %v197_v10 = vadd.f32 %v2941_v62, %v184_v50 }
  0xa6   :  { %v373_v1 = vpop.f32.mrf.mxu3  ;;  %v324_v7 = vadd.f32 %v309_v60, %v261_v5 }
  0xa7   :  { %v249_v3 = vpop.f32.mrf.mxu1 }
  0xa8   :  { %v388_v12 = vadd.f32 %v373_v1, %v324_v7  ;;  %v262_v14 = vadd.f32 %v249_v3, %v197_v10 }
  0xac   :  { %v187_v55 = vpop.f32.mrf.mxu0 }
  0xad   :  { %v312_v6 = vpop.f32.mrf.mxu2  ;;  %v198_v23 = vadd.f32 %v2941_v62, %v187_v55 }
  0xae   :  { %v376_v11 = vpop.f32.mrf.mxu3  ;;  %v325_v18 = vadd.f32 %v312_v6, %v262_v14 }
  0xaf   :  { %v252_v16 = vpop.f32.mrf.mxu1 }
  0xb0   :  { %v389_v24 = vadd.f32 %v376_v11, %v325_v18  ;;  %v263_v28 = vadd.f32 %v252_v16, %v198_v23  ;;  %v757_v23 = vld [vmem:[#allocation5 + $0x30] sm:$0xff] }
  0xb1   :  { %786 = vmatpush.msra.mxu0 %v757_v23 }
  0xb4   :  { %v190_v61 = vpop.f32.mrf.mxu0 }
  0xb5   :  { %v315_v22 = vpop.f32.mrf.mxu2  ;;  %v199_v32 = vadd.f32 %v2941_v62, %v190_v61 }
  0xb6   :  { %v379_v25 = vpop.f32.mrf.mxu3  ;;  %v326_v30 = vadd.f32 %v315_v22, %v263_v28  ;;  %v714_v22 = vld [vmem:[#allocation5 + $0x10] sm:$0xff] }
  0xb7   :  { %v255_v33 = vpop.f32.mrf.mxu1 }
  0xb8   :  { %v390_v39 = vadd.f32 %v379_v25, %v326_v30  ;;  %v264_v43 = vadd.f32 %v255_v33, %v199_v32  ;;  %v713_v25 = vld [vmem:[#allocation5 + $0x8] sm:$0xff]  ;;  %v755_v30 = vld [vmem:[#allocation5 + $0x20] sm:$0xff]  ;;  %v899_v33 = vld [vmem:[#allocation5 + $0x90] sm:$0xff] }
  0xbc   :  { %v193_v4 = vpop.f32.mrf.mxu0 }
  0xbd   :  { %v318_v38 = vpop.f32.mrf.mxu2  ;;  %v200_v48 = vadd.f32 %v2941_v62, %v193_v4 }
  0xbe   :  { %v382_v45 = vpop.f32.mrf.mxu3  ;;  %v327_v46 = vadd.f32 %v318_v38, %v264_v43  ;;  %v805_v38 = vld [vmem:[#allocation5 + $0x50] sm:$0xff] }
  0xbf   :  { %v258_v51 = vpop.f32.mrf.mxu1 }
  0xc0   :  { %v391_v52 = vadd.f32 %v382_v45, %v327_v46  ;;  %v265_v57 = vadd.f32 %v258_v51, %v200_v48 }
  0xc4   :  { %v417_v13 = vpop.f32.mrf.mxu0 }
  0xc5   :  { %v432_v15 = vadd.f32 %v417_v13, %v388_v12  ;;  %v321_v55 = vpop.f32.mrf.mxu2 }
  0xc6   :  { %v328_v59 = vadd.f32 %v321_v55, %v265_v57  ;;  %v385_v61 = vpop.f32.mrf.mxu3  ;;  %v850_v57 = vld [vmem:[#allocation5 + $0x60] sm:$0xff] }
  0xc7   :  { %v2945_v19 = vmax.f32 %v432_v15, 0.0 }
  0xc8   :  { %v392_v0 = vadd.f32 %v385_v61, %v328_v59 }
  0xc9   :  { %2364 = vmatmul.msk.f32.vlgmr.msrb.gmra.mxu1 %vm451_vm4, %v2945_v19  ;;  %v503_v34 = vrot.slane %v2945_v19, 2  ;;  %v558_v36 = vrot.slane %v2945_v19, 4  ;;  %v613_v6 = vrot.slane %v2945_v19, 6  ;;  %v715_v19 = vld [vmem:[#allocation5 + $0x18] sm:$0xff] }
  0xca   :  { %737 = vmatpush.msra.mxu3 %v715_v19 }
  0xcc   :  { %v420_v26 = vpop.f32.mrf.mxu0  ;;  %738 = vmatpush.msra.mxu3 %v714_v22 }
  0xcd   :  { %v433_v29 = vadd.f32 %v420_v26, %v389_v24  ;;  %v756_v26 = vld [vmem:[#allocation5 + $0x28] sm:$0xff] }
  0xce   :  { %739 = vmatpush.msra.mxu3 %v713_v25  ;;  %787 = vmatpush.msra.mxu0 %v756_v26 }
  0xcf   :  { %v438_v31 = vmax.f32 %v433_v29, 0.0  ;;  %v712_v29 = vld [vmem:[#allocation5] sm:$0xff] }
  0xd0   :  { %740 = vmatpush.msra.mxu3 %v712_v29  ;;  %788 = vmatpush.msra.mxu0 %v755_v30 }
  0xd1   :  { %2365 = vmatmul.msk.f32.gmra.mxu1 %vm451_vm4, %v438_v31  ;;  %v504_v35 = vrot.slane %v438_v31, 2  ;;  %v559_v37 = vrot.slane %v438_v31, 4  ;;  %v614_v4 = vrot.slane %v438_v31, 6 }
  0xd3   :  { %v505_v40 = vsel %vm204_vm2, %v503_v34, %v504_v35  ;;  %v560_v41 = vsel %vm160_vm0, %v558_v36, %v559_v37  ;;  %v615_v8 = vsel %vm331_vm3, %v613_v6, %v614_v4  ;;  %v898_v34 = vld [vmem:[#allocation5 + $0x88] sm:$0xff]  ;;  %v897_v36 = vld [vmem:[#allocation5 + $0x80] sm:$0xff] }
  0xd4   :  { %v423_v42 = vpop.f32.mrf.mxu0  ;;  %2368 = vmatmul.msk.f32.vlgmr.msrb.gmra.mxu2 %vm451_vm4, %v505_v40  ;;  %2372 = vmatmul.msk.f32.vlgmr.msrb.gmra.mxu3 %vm451_vm4, %v560_v41  ;;  %v2455_v40 = vld [vmem:[%s3388_s4] ss:$0 sm:$0xff]  ;;  %v853_v41 = vld [vmem:[#allocation5 + $0x78] sm:$0xff] }
  0xd5   :  { %v434_v44 = vadd.f32 %v423_v42, %v390_v39  ;;  %v804_v42 = vld [vmem:[#allocation5 + $0x48] sm:$0xff]  ;;  %879 = vmatpush.msrb.mxu0 %v853_v41  ;;  %v943_v41 = vld [vmem:[#allocation7 + $0x18] sm:$0xff] }
  0xd6   :  { %962 = vmatpush.msrb.mxu2 %v943_v41 }
  0xd7   :  { %v439_v47 = vmax.f32 %v434_v44, 0.0  ;;  %v852_v44 = vld [vmem:[#allocation5 + $0x70] sm:$0xff] }
  0xd8   :  { %880 = vmatpush.msrb.mxu0 %v852_v44  ;;  %v940_v44 = vld [vmem:[#allocation7] sm:$0xff] }
  0xd9   :  { %2366 = vmatmul.msk.f32.gmra.mxu1 %vm451_vm4, %v439_v47  ;;  %v506_v49 = vrot.slane %v439_v47, 2  ;;  %v561_v50 = vrot.slane %v439_v47, 4  ;;  %v616_v13 = vrot.slane %v439_v47, 6 }
  0xdb   :  { %v507_v53 = vsel %vm204_vm2, %v504_v35, %v506_v49  ;;  %v562_v54 = vsel %vm160_vm0, %v559_v37, %v561_v50  ;;  %v617_v14 = vsel %vm331_vm3, %v614_v4, %v616_v13  ;;  %v806_v35 = vld [vmem:[#allocation5 + $0x58] sm:$0xff] }
  0xdc   :  { %v426_v56 = vpop.f32.mrf.mxu0  ;;  %2369 = vmatmul.msk.f32.gmra.mxu2 %vm451_vm4, %v507_v53  ;;  %2373 = vmatmul.msk.f32.gmra.mxu3 %vm451_vm4, %v562_v54 }
  0xdd   :  { %v435_v58 = vadd.f32 %v426_v56, %v391_v52  ;;  %832 = vmatpush.msrb.mxu3 %v806_v35 }
  0xdf   :  { %v440_v60 = vmax.f32 %v435_v58, 0.0  ;;  %833 = vmatpush.msrb.mxu3 %v805_v38 }
  0xe1   :  { %2367 = vmatmul.msk.f32.gmra.mxu1 %vm451_vm4, %v440_v60  ;;  %v508_v62 = vrot.slane %v440_v60, 2  ;;  %v563_v63 = vrot.slane %v440_v60, 4  ;;  %v618_v15 = vrot.slane %v440_v60, 6  ;;  %834 = vmatpush.msrb.mxu3 %v804_v42  ;;  %v942_v42 = vld [vmem:[#allocation7 + $0x10] sm:$0xff] }
  0xe2   :  { %963 = vmatpush.msrb.mxu2 %v942_v42 }
  0xe3   :  { %v509_v1 = vsel %vm204_vm2, %v506_v49, %v508_v62  ;;  %v564_v2 = vsel %vm160_vm0, %v561_v50, %v563_v63  ;;  %v619_v16 = vsel %vm331_vm3, %v616_v13, %v618_v15  ;;  %v803_v49 = vld [vmem:[#allocation5 + $0x40] sm:$0xff]  ;;  %v851_v50 = vld [vmem:[#allocation5 + $0x68] sm:$0xff] }
  0xe4   :  { %v429_v3 = vpop.f32.mrf.mxu0  ;;  %2370 = vmatmul.msk.f32.gmra.mxu2 %vm451_vm4, %v509_v1  ;;  %2374 = vmatmul.msk.f32.gmra.mxu3 %vm451_vm4, %v564_v2 }
  0xe5   :  { %v436_v5 = vadd.f32 %v429_v3, %v392_v0  ;;  %835 = vmatpush.msrb.mxu3 %v803_v49  ;;  %881 = vmatpush.msrb.mxu0 %v851_v50  ;;  %v1097_v50 = vld [vmem:[#allocation7 + $0x98] sm:$0xff] }
  0xe7   :  { %v441_v7 = vmax.f32 %v436_v5, 0.0  ;;  %882 = vmatpush.msrb.mxu0 %v850_v57  ;;  %v1057_v57 = vld [vmem:[#allocation7 + $0x70] sm:$0xff] }
  0xe9   :  { %2376 = vmatmul.msk.f32.vlgmr.msra.gmra.mxu1 %vm451_vm4, %v615_v8  ;;  %v510_v9 = vrot.slane %v441_v7, 2  ;;  %v565_v10 = vrot.slane %v441_v7, 4  ;;  %v620_v17 = vrot.slane %v441_v7, 6 }
  0xeb   :  { %v511_v11 = vsel %vm204_vm2, %v508_v62, %v510_v9  ;;  %v566_v12 = vsel %vm160_vm0, %v563_v63, %v565_v10  ;;  %v621_v18 = vsel %vm331_vm3, %v618_v15, %v620_v17 }
  0xec   :  { %2371 = vmatmul.msk.f32.gmra.mxu2 %vm451_vm4, %v511_v11  ;;  %2375 = vmatmul.msk.f32.gmra.mxu3 %vm451_vm4, %v566_v12 }
  0xf1   :  { %2377 = vmatmul.msk.f32.gmra.mxu1 %vm451_vm4, %v617_v14 }
  0xf4   :  { %2380 = vmatmul.msk.f32.vlgmr.msra.gmra.mxu2 %vm451_vm4, %v438_v31  ;;  %v900_v31 = vld [vmem:[#allocation5 + $0x98] sm:$0xff] }
  0xf5   :  { %915 = vmatpush.msrb.mxu1 %v900_v31 }
  0xf7   :  { %916 = vmatpush.msrb.mxu1 %v899_v33 }
  0xf9   :  { %2378 = vmatmul.msk.f32.gmra.mxu1 %vm451_vm4, %v619_v16 }
  0xfa   :  { %917 = vmatpush.msrb.mxu1 %v898_v34 }
  0xfc   :  { %2381 = vmatmul.msk.f32.gmra.mxu2 %vm451_vm4, %v439_v47  ;;  %918 = vmatpush.msrb.mxu1 %v897_v36 }
  0xfe   :  { %1112 = vmatpush.msra.mxu1 %v1097_v50  ;;  %v1128_v50 = vld [vmem:[#allocation8 + $0x8] sm:$0xff] }
 0x101   :  { %2379 = vmatmul.msk.f32.gmra.mxu1 %vm451_vm4, %v621_v18 }
 0x104   :  { %2382 = vmatmul.msk.f32.gmra.mxu2 %vm451_vm4, %v440_v60 }
 0x10c   :  { %2383 = vmatmul.msk.f32.gmra.mxu2 %vm451_vm4, %v441_v7 }
 0x146   :  { %v481_v21 = vpop.f32.mrf.mxu1 }
 0x147   :  { %v493_v46 = vadd.f32 %v2455_v40, %v481_v21 }
 0x14e   :  { %v484_v24 = vpop.f32.mrf.mxu1 }
 0x14f   :  { %v494_v52 = vadd.f32 %v2455_v40, %v484_v24 }
 0x156   :  { %v487_v28 = vpop.f32.mrf.mxu1 }
 0x157   :  { %v537_v27 = vpop.f32.mrf.mxu2  ;;  %v592_v43 = vpop.f32.mrf.mxu3  ;;  %v495_v62 = vadd.f32 %v2455_v40, %v487_v28 }
 0x158   :  { %v549_v48 = vadd.f32 %v537_v27, %v493_v46  ;;  %v1019_v46 = vld [vmem:[#allocation7 + $0x58] sm:$0xff] }
 0x15a   :  { %v604_v51 = vadd.f32 %v592_v43, %v549_v48  ;;  %v941_v43 = vld [vmem:[#allocation7 + $0x8] sm:$0xff]  ;;  %v1018_v48 = vld [vmem:[#allocation7 + $0x50] sm:$0xff] }
 0x15b   :  { %964 = vmatpush.msrb.mxu2 %v941_v43 }
 0x15d   :  { %965 = vmatpush.msrb.mxu2 %v940_v44 }
 0x15e   :  { %v490_v37 = vpop.f32.mrf.mxu1 }
 0x15f   :  { %v540_v32 = vpop.f32.mrf.mxu2  ;;  %v595_v53 = vpop.f32.mrf.mxu3  ;;  %v496_v9 = vadd.f32 %v2455_v40, %v490_v37 }
 0x160   :  { %v550_v58 = vadd.f32 %v540_v32, %v494_v52 }
 0x162   :  { %v605_v61 = vadd.f32 %v595_v53, %v550_v58  ;;  %v1058_v53 = vld [vmem:[#allocation7 + $0x78] sm:$0xff]  ;;  %v1094_v58 = vld [vmem:[#allocation7 + $0x80] sm:$0xff] }
 0x166   :  { %v647_v45 = vpop.f32.mrf.mxu1 }
 0x167   :  { %v543_v39 = vpop.f32.mrf.mxu2  ;;  %v659_v54 = vadd.f32 %v647_v45, %v604_v51  ;;  %v598_v3 = vpop.f32.mrf.mxu3  ;;  %v1096_v51 = vld [vmem:[#allocation7 + $0x90] sm:$0xff] }
 0x168   :  { %v551_v1 = vadd.f32 %v543_v39, %v495_v62  ;;  %1113 = vmatpush.msra.mxu1 %v1096_v51  ;;  %v1016_v62 = vld [vmem:[#allocation7 + $0x40] sm:$0xff]  ;;  %v3039_v51 = vld [vmem:[#allocation10 + $0x8] sm:$0xff] }
 0x16a   :  { %v606_v6 = vadd.f32 %v598_v3, %v551_v1  ;;  %v976_v1 = vld [vmem:[#allocation7 + $0x20] sm:$0xff] }
 0x16e   :  { %v650_v55 = vpop.f32.mrf.mxu1 }
 0x16f   :  { %v546_v47 = vpop.f32.mrf.mxu2  ;;  %v660_v63 = vadd.f32 %v650_v55, %v605_v61  ;;  %v601_v16 = vpop.f32.mrf.mxu3  ;;  %v978_v55 = vld [vmem:[#allocation7 + $0x30] sm:$0xff] }
 0x170   :  { %v552_v13 = vadd.f32 %v546_v47, %v496_v9  ;;  %v979_v47 = vld [vmem:[#allocation7 + $0x38] sm:$0xff] }
 0x171   :  { %1002 = vmatpush.msra.mxu2 %v979_v47  ;;  %v3032_v47 = vld [vmem:[#allocation10 + $0x18] sm:$0xff] }
 0x172   :  { %v607_v18 = vadd.f32 %v601_v16, %v552_v13 }
 0x173   :  { %1003 = vmatpush.msra.mxu2 %v978_v55 }
 0x176   :  { %v653_v4 = vpop.f32.mrf.mxu1 }
 0x177   :  { %v687_v56 = vpop.f32.mrf.mxu2  ;;  %v661_v10 = vadd.f32 %v653_v4, %v606_v6 }
 0x178   :  { %v699_v59 = vadd.f32 %v687_v56, %v659_v54  ;;  %v1095_v54 = vld [vmem:[#allocation7 + $0x88] sm:$0xff] }
 0x179   :  { %1114 = vmatpush.msra.mxu1 %v1095_v54  ;;  %v1017_v56 = vld [vmem:[#allocation7 + $0x48] sm:$0xff]  ;;  %v2749_v54 = vmov 0.0  }
 0x17a   :  { %v703_v60 = vmax.f32 %v699_v59, 0.0  ;;  %v977_v59 = vld [vmem:[#allocation7 + $0x28] sm:$0xff] }
 0x17b   :  { %1115 = vmatpush.msra.mxu1 %v1094_v58  ;;  %1004 = vmatpush.msra.mxu2 %v977_v59 }
 0x17c   :  { %2384 = vmatmul.msk.f32.vlgmr.msra.gmra.mxu3 %vm451_vm4, %v703_v60  ;;  %v760_v7 = vrot.slane %v703_v60, 2  ;;  %v807_v25 = vrot.slane %v703_v60, 4  ;;  %v854_v33 = vrot.slane %v703_v60, 6  ;;  %v1056_v60 = vld [vmem:[#allocation7 + $0x68] sm:$0xff] }
 0x17d   :  { %1041 = vmatpush.msra.mxu3 %v1019_v46  ;;  %1005 = vmatpush.msra.mxu2 %v976_v1  ;;  %v1130_v46 = vld [vmem:[#allocation8 + $0x18] sm:$0xff] }
 0x17e   :  { %v656_v17 = vpop.f32.mrf.mxu1 }
 0x17f   :  { %v690_v0 = vpop.f32.mrf.mxu2  ;;  %v662_v20 = vadd.f32 %v656_v17, %v607_v18  ;;  %1042 = vmatpush.msra.mxu3 %v1018_v48  ;;  %v1129_v48 = vld [vmem:[#allocation8 + $0x10] sm:$0xff] }
 0x180   :  { %v700_v2 = vadd.f32 %v690_v0, %v660_v63  ;;  %v1055_v63 = vld [vmem:[#allocation7 + $0x60] sm:$0xff] }
 0x181   :  { %1043 = vmatpush.msra.mxu3 %v1017_v56 }
 0x182   :  { %v704_v5 = vmax.f32 %v700_v2, 0.0  ;;  %v2456_v2 = vld [vmem:[%s3390_s6] ss:$0 sm:$0xff] }
 0x183   :  { %1044 = vmatpush.msra.mxu3 %v1016_v62 }
 0x184   :  { %2385 = vmatmul.msk.f32.gmra.mxu3 %vm451_vm4, %v704_v5  ;;  %2396 = vmatmul.msk.f32.vlgmr.msrb.gmra.mxu1 %vm451_vm4, %v704_v5  ;;  %v761_v8 = vrot.slane %v704_v5, 2  ;;  %v808_v23 = vrot.slane %v704_v5, 4  ;;  %v855_v31 = vrot.slane %v704_v5, 6 }
 0x185   :  { %1321 = vmatpush.msrb.mxu1 %v3032_v47 }
 0x186   :  { %v762_v11 = vsel %vm204_vm2, %v760_v7, %v761_v8  ;;  %v809_v27 = vsel %vm160_vm0, %v807_v25, %v808_v23  ;;  %v856_v34 = vsel %vm331_vm3, %v854_v33, %v855_v31 }
 0x187   :  { %v693_v12 = vpop.f32.mrf.mxu2  ;;  %2387 = vmatmul.msk.f32.vlgmr.msra.gmra.mxu0 %vm451_vm4, %v762_v11 }
 0x188   :  { %v701_v14 = vadd.f32 %v693_v12, %v661_v10  ;;  %1080 = vmatpush.msra.mxu0 %v1058_v53  ;;  %v3043_v53 = vld [vmem:[#allocation10] sm:$0xff] }
 0x18a   :  { %v705_v15 = vmax.f32 %v701_v14, 0.0  ;;  %1081 = vmatpush.msra.mxu0 %v1057_v57  ;;  %v2457_v57 = vld [vmem:[%s3392_s8] ss:$0 sm:$0xff] }
 0x18c   :  { %2386 = vmatmul.msk.f32.gmra.mxu3 %vm451_vm4, %v705_v15  ;;  %2397 = vmatmul.msk.f32.gmra.mxu1 %vm451_vm4, %v705_v15  ;;  %v763_v19 = vrot.slane %v705_v15, 2  ;;  %v810_v30 = vrot.slane %v705_v15, 4  ;;  %v857_v36 = vrot.slane %v705_v15, 6 }
 0x18d   :  { %1082 = vmatpush.msra.mxu0 %v1056_v60 }
 0x18e   :  { %v764_v21 = vsel %vm204_vm2, %v761_v8, %v763_v19  ;;  %v811_v32 = vsel %vm160_vm0, %v808_v23, %v810_v30  ;;  %v858_v38 = vsel %vm331_vm3, %v855_v31, %v857_v36 }
 0x18f   :  { %v696_v22 = vpop.f32.mrf.mxu2  ;;  %2388 = vmatmul.msk.f32.gmra.mxu0 %vm451_vm4, %v764_v21 }
 0x190   :  { %v702_v24 = vadd.f32 %v696_v22, %v662_v20  ;;  %1083 = vmatpush.msra.mxu0 %v1055_v63 }
 0x192   :  { %v706_v26 = vmax.f32 %v702_v24, 0.0 }
 0x194   :  { %2390 = vmatmul.msk.f32.vlgmr.msrb.gmra.mxu3 %vm451_vm4, %v809_v27  ;;  %2398 = vmatmul.msk.f32.gmra.mxu1 %vm451_vm4, %v706_v26  ;;  %v765_v28 = vrot.slane %v706_v26, 2  ;;  %v812_v35 = vrot.slane %v706_v26, 4  ;;  %v859_v39 = vrot.slane %v706_v26, 6 }
 0x195   :  { %1192 = vmatpush.msrb.mxu3 %v3032_v47 }
 0x196   :  { %v766_v29 = vsel %vm204_vm2, %v763_v19, %v765_v28  ;;  %v813_v37 = vsel %vm160_vm0, %v810_v30, %v812_v35  ;;  %v860_v40 = vsel %vm331_vm3, %v857_v36, %v859_v39 }
 0x197   :  { %2389 = vmatmul.msk.f32.gmra.mxu0 %vm451_vm4, %v766_v29 }
 0x19c   :  { %2391 = vmatmul.msk.f32.gmra.mxu3 %vm451_vm4, %v811_v32 }
 0x19f   :  { %2393 = vmatmul.msk.f32.vlgmr.msrb.gmra.mxu0 %vm451_vm4, %v856_v34 }
 0x1a4   :  { %2392 = vmatmul.msk.f32.gmra.mxu3 %vm451_vm4, %v813_v37 }
 0x1a7   :  { %2394 = vmatmul.msk.f32.gmra.mxu0 %vm451_vm4, %v858_v38 }
 0x1af   :  { %2395 = vmatmul.msk.f32.gmra.mxu0 %vm451_vm4, %v860_v40 }
 0x1ff   :  { %v742_v45 = vpop.f32.mrf.mxu3 }
 0x200   :  { %v751_v4 = vadd.f32 %v2456_v2, %v742_v45 }
 0x201   :  { %v920_v7 = vpop.f32.mrf.mxu1 }
 0x204   :  { %v790_v49 = vpop.f32.mrf.mxu0 }
 0x205   :  { %v799_v6 = vadd.f32 %v790_v49, %v751_v4  ;;  %v3036_v49 = vld [vmem:[#allocation10 + $0x10] sm:$0xff] }
 0x206   :  { %1193 = vmatpush.msrb.mxu3 %v3036_v49  ;;  %1322 = vmatpush.msrb.mxu1 %v3036_v49 }
 0x207   :  { %v745_v52 = vpop.f32.mrf.mxu3 }
 0x208   :  { %v752_v11 = vadd.f32 %v2456_v2, %v745_v52  ;;  %v1127_v52 = vld [vmem:[#allocation8] sm:$0xff]  ;;  %1194 = vmatpush.msrb.mxu3 %v3039_v51  ;;  %1323 = vmatpush.msrb.mxu1 %v3039_v51 }
 0x209   :  { %v923_v17 = vpop.f32.mrf.mxu1 }
 0x20a   :  { %1195 = vmatpush.msrb.mxu3 %v3043_v53  ;;  %1324 = vmatpush.msrb.mxu1 %v3043_v53 }
 0x20c   :  { %v793_v61 = vpop.f32.mrf.mxu0 }
 0x20d   :  { %v800_v14 = vadd.f32 %v793_v61, %v752_v11 }
 0x20f   :  { %v748_v0 = vpop.f32.mrf.mxu3 }
 0x210   :  { %v753_v20 = vadd.f32 %v2456_v2, %v748_v0 }
 0x211   :  { %v926_v34 = vpop.f32.mrf.mxu1 }
 0x214   :  { %v796_v3 = vpop.f32.mrf.mxu0 }
 0x215   :  { %v801_v23 = vadd.f32 %v796_v3, %v753_v20 }
 0x217   :  { %v837_v5 = vpop.f32.mrf.mxu3 }
 0x218   :  { %v846_v8 = vadd.f32 %v837_v5, %v799_v6 }
 0x21c   :  { %v884_v9 = vpop.f32.mrf.mxu0 }
 0x21d   :  { %v893_v10 = vadd.f32 %v884_v9, %v846_v8 }
 0x21f   :  { %v929_v12 = vadd.f32 %v920_v7, %v893_v10  ;;  %v840_v13 = vpop.f32.mrf.mxu3 }
 0x220   :  { %v847_v16 = vadd.f32 %v840_v13, %v800_v14  ;;  %v3064_v14 = vld [vmem:[%s3395_s11] ss:$0 sm:$0xff]  ;;  %s2751_s11 = smov 32  }
 0x221   :  { %v932_v15 = vmax.f32 %v929_v12, 0.0 }
 0x223   :  { %2399 = vmatmul.msk.f32.vlgmr.msrb.gmra.mxu2 %vm451_vm4, %v932_v15  ;;  %v1020_v25 = vrot.slane %v932_v15, 4  ;;  %v1059_v28 = vrot.slane %v932_v15, 6  ;;  %v981_v37 = vrot.slane %v932_v15, 2 }
 0x224   :  { %v887_v18 = vpop.f32.mrf.mxu0  ;;  %1153 = vmatpush.msrb.mxu2 %v1130_v46  ;;  %v3131_v46 = vld [vmem:[%s3396_s12] sm:$0xff] }
 0x225   :  { %v894_v19 = vadd.f32 %v887_v18, %v847_v16 }
 0x226   :  { %1154 = vmatpush.msrb.mxu2 %v1129_v48 }
 0x227   :  { %v930_v21 = vadd.f32 %v923_v17, %v894_v19  ;;  %v843_v22 = vpop.f32.mrf.mxu3 }
 0x228   :  { %v848_v26 = vadd.f32 %v843_v22, %v801_v23  ;;  %1155 = vmatpush.msrb.mxu2 %v1128_v50 }
 0x229   :  { %v933_v24 = vmax.f32 %v930_v21, 0.0 }
 0x22a   :  { %1156 = vmatpush.msrb.mxu2 %v1127_v52 }
 0x22b   :  { %2400 = vmatmul.msk.f32.gmra.mxu2 %vm451_vm4, %v933_v24  ;;  %2407 = vmatmul.msk.f32.vlgmr.msra.gmra.mxu1 %vm451_vm4, %v933_v24  ;;  %v1021_v27 = vrot.slane %v933_v24, 4  ;;  %v1060_v29 = vrot.slane %v933_v24, 6  ;;  %v982_v35 = vrot.slane %v933_v24, 2 }
 0x22c   :  { %v890_v30 = vpop.f32.mrf.mxu0  ;;  %1601 = vmatpush.msra.mxu1 %v3032_v47 }
 0x22d   :  { %v895_v31 = vadd.f32 %v890_v30, %v848_v26  ;;  %v1022_v32 = vsel %vm160_vm0, %v1020_v25, %v1021_v27  ;;  %v1061_v33 = vsel %vm331_vm3, %v1059_v28, %v1060_v29  ;;  %v983_v39 = vsel %vm204_vm2, %v981_v37, %v982_v35 }
 0x22e   :  { %2403 = vmatmul.msk.f32.vlgmr.msra.gmra.mxu3 %vm451_vm4, %v1022_v32  ;;  %2405 = vmatmul.msk.f32.vlgmr.msra.gmra.mxu0 %vm451_vm4, %v1061_v33 }
 0x22f   :  { %v931_v36 = vadd.f32 %v926_v34, %v895_v31  ;;  %1461 = vmatpush.msra.mxu3 %v3032_v47  ;;  %1602 = vmatpush.msra.mxu1 %v3036_v49 }
 0x231   :  { %v934_v38 = vmax.f32 %v931_v36, 0.0  ;;  %1462 = vmatpush.msra.mxu3 %v3036_v49  ;;  %1603 = vmatpush.msra.mxu1 %v3039_v51 }
 0x233   :  { %2401 = vmatmul.msk.f32.vlgmr.msra.gmra.mxu2 %vm451_vm4, %v983_v39  ;;  %2408 = vmatmul.msk.f32.gmra.mxu1 %vm451_vm4, %v934_v38  ;;  %v1023_v40 = vrot.slane %v934_v38, 4  ;;  %v1062_v41 = vrot.slane %v934_v38, 6  ;;  %v984_v44 = vrot.slane %v934_v38, 2  ;;  %v3079_v39 = vld [vmem:[%s3396_s12 + $0x38] sm:$0xff] }
 0x234   :  { %1463 = vmatpush.msra.mxu3 %v3039_v51  ;;  %1604 = vmatpush.msra.mxu1 %v3043_v53 }
 0x235   :  { %v1024_v42 = vsel %vm160_vm0, %v1021_v27, %v1023_v40  ;;  %v1063_v43 = vsel %vm331_vm3, %v1060_v29, %v1062_v41  ;;  %v985_v45 = vsel %vm204_vm2, %v982_v35, %v984_v44  ;;  %v3084_v40 = vld [vmem:[%s3396_s12 + $0x30] sm:$0xff]  ;;  %1258 = vmatpush.msrb.mxu0 %v3079_v39  ;;  %1395 = vmatpush.msra.mxu2 %v3079_v39  ;;  %v3091_v41 = vld [vmem:[%s3396_s12 + $0x28] sm:$0xff] }
 0x236   :  { %2404 = vmatmul.msk.f32.gmra.mxu3 %vm451_vm4, %v1024_v42  ;;  %2406 = vmatmul.msk.f32.gmra.mxu0 %vm451_vm4, %v1063_v43  ;;  %v3099_v42 = vld [vmem:[%s3396_s12 + $0x20] sm:$0xff]  ;;  %v3107_v43 = vld [vmem:[%s3396_s12 + $0x18] sm:$0xff]  ;;  %v3115_v44 = vld [vmem:[%s3396_s12 + $0x10] sm:$0xff] }
 0x237   :  { %1464 = vmatpush.msra.mxu3 %v3043_v53  ;;  %1259 = vmatpush.msrb.mxu0 %v3084_v40 }
 0x238   :  { %1396 = vmatpush.msra.mxu2 %v3084_v40 }
 0x239   :  { %1260 = vmatpush.msrb.mxu0 %v3091_v41 }
 0x23a   :  { %1397 = vmatpush.msra.mxu2 %v3091_v41 }
 0x23b   :  { %2402 = vmatmul.msk.f32.gmra.mxu2 %vm451_vm4, %v985_v45  ;;  %1261 = vmatpush.msrb.mxu0 %v3099_v42  ;;  %v3123_v45 = vld [vmem:[%s3396_s12 + $0x8] sm:$0xff] }
 0x23c   :  { %1398 = vmatpush.msra.mxu2 %v3099_v42 }
 0x23d   :  { %1262 = vmatpush.msrb.mxu0 %v3107_v43 }
 0x23e   :  { %1196 = vmatmul.f32.vlgmr.msrb.gmra.mxu3 %v2749_v54  ;;  %1399 = vmatpush.msra.mxu2 %v3107_v43 }
 0x23f   :  { %1675 = vmatpush.msrb.mxu3 %v3079_v39  ;;  %1263 = vmatpush.msrb.mxu0 %v3115_v44 }
 0x240   :  { %1400 = vmatpush.msra.mxu2 %v3115_v44 }
 0x241   :  { %1676 = vmatpush.msrb.mxu3 %v3084_v40  ;;  %1264 = vmatpush.msrb.mxu0 %v3123_v45 }
 0x242   :  { %1401 = vmatpush.msra.mxu2 %v3123_v45 }
 0x243   :  { %1677 = vmatpush.msrb.mxu3 %v3091_v41  ;;  %1265 = vmatpush.msrb.mxu0 %v3131_v46 }
 0x244   :  { %1402 = vmatpush.msra.mxu2 %v3131_v46 }
 0x245   :  { %1678 = vmatpush.msrb.mxu3 %v3099_v42  ;;  %1535 = vmatpush.msra.mxu0 %v3079_v39 }
 0x247   :  { %1679 = vmatpush.msrb.mxu3 %v3107_v43  ;;  %1536 = vmatpush.msra.mxu0 %v3084_v40 }
 0x249   :  { %1680 = vmatpush.msrb.mxu3 %v3115_v44  ;;  %1537 = vmatpush.msra.mxu0 %v3091_v41 }
 0x24b   :  { %1681 = vmatpush.msrb.mxu3 %v3123_v45  ;;  %1538 = vmatpush.msra.mxu0 %v3099_v42 }
 0x24d   :  { %1682 = vmatpush.msrb.mxu3 %v3131_v46  ;;  %1539 = vmatpush.msra.mxu0 %v3107_v43 }
 0x24f   :  { %1540 = vmatpush.msra.mxu0 %v3115_v44 }
 0x251   :  { %1541 = vmatpush.msra.mxu0 %v3123_v45 }
 0x253   :  { %1542 = vmatpush.msra.mxu0 %v3131_v46 }
 0x2a6   :  { %v967_v55 = vpop.f32.mrf.mxu2 }
 0x2a7   :  { %v973_v58 = vadd.f32 %v2457_v57, %v967_v55  ;;  %v3171_v55 = vld [vmem:[%s3397_s13] ss:$0 sm:$0xff] }
 0x2a8   :  { %v1117_v0 = vpop.f32.mrf.mxu1 }
 0x2ab   :  { %v1085_v62 = vpop.f32.mrf.mxu0 }
 0x2ae   :  { %v970_v56 = vpop.f32.mrf.mxu2 }
 0x2af   :  { %v974_v2 = vadd.f32 %v2457_v57, %v970_v56 }
 0x2b0   :  { %v1120_v11 = vpop.f32.mrf.mxu1 }
 0x2b1   :  { %v1046_v59 = vpop.f32.mrf.mxu3 }
 0x2b3   :  { %v1088_v9 = vpop.f32.mrf.mxu0 }
 0x2b6   :  { %v1007_v60 = vpop.f32.mrf.mxu2 }
 0x2b7   :  { %v1013_v61 = vadd.f32 %v1007_v60, %v973_v58 }
 0x2b9   :  { %v1052_v63 = vadd.f32 %v1046_v59, %v1013_v61  ;;  %v1049_v7 = vpop.f32.mrf.mxu3 }
 0x2bb   :  { %v1091_v1 = vadd.f32 %v1085_v62, %v1052_v63 }
 0x2bd   :  { %v1123_v3 = vadd.f32 %v1117_v0, %v1091_v1 }
 0x2be   :  { %v1010_v4 = vpop.f32.mrf.mxu2 }
 0x2bf   :  { %v1125_v5 = vmax.f32 %v1123_v3, 0.0  ;;  %v1014_v6 = vadd.f32 %v1010_v4, %v974_v2 }
 0x2c1   :  { %v1053_v8 = vadd.f32 %v1049_v7, %v1014_v6  ;;  %2409 = vmatmul.msk.f32.vlgmr.msrb.gmra.mxu2 %vm451_vm4, %v1125_v5  ;;  %v1197_v16 = vpop.f32.mrf.mxu3 }
 0x2c2   :  { %1810 = vmatpush.msrb.mxu2 %v3079_v39 }
 0x2c3   :  { %v1092_v10 = vadd.f32 %v1088_v9, %v1053_v8 }
 0x2c4   :  { %1811 = vmatpush.msrb.mxu2 %v3084_v40 }
 0x2c5   :  { %v1124_v12 = vadd.f32 %v1120_v11, %v1092_v10 }
 0x2c6   :  { %1812 = vmatpush.msrb.mxu2 %v3091_v41 }
 0x2c7   :  { %v1126_v13 = vmax.f32 %v1124_v12, 0.0 }
 0x2c8   :  { %1813 = vmatpush.msrb.mxu2 %v3099_v42 }
 0x2c9   :  { %2410 = vmatmul.msk.f32.gmra.mxu2 %vm451_vm4, %v1126_v13 }
 0x2ca   :  { %1814 = vmatpush.msrb.mxu2 %v3107_v43 }
 0x2cc   :  { %1815 = vmatpush.msrb.mxu2 %v3115_v44 }
 0x2ce   :  { %1816 = vmatpush.msrb.mxu2 %v3123_v45 }
 0x2d0   :  { %1817 = vmatpush.msrb.mxu2 %v3131_v46 }
 0x344   :  { %v1158_v15 = vpop.f32.mrf.mxu2 }
 0x345   :  { %v3067_v17 = vadd.f32 %v3064_v14, %v1158_v15 }
 0x347   :  { %v1200_v18 = vadd.f32 %v1197_v16, %v3067_v17 }
 0x349   :  { %2461 = vtanh.f32 %v1200_v18  ;;  %v2411_v20 = vmul.f32 -1.442695, %v1200_v18 }
 0x34b   :  { %2463 = vpow2.f32 %v2411_v20 }
 0x34f   :  { %v2462_v19 = vpop.eup %2461 }
 0x350   :  { %1223 = vrot.lane.b32.xlu0 %v2462_v19, %s2750_s30 }
 0x351   :  { %v2464_v21 = vpop.eup %2463 }
 0x352   :  { %v1204_v22 = vadd.f32 1.0, %v2464_v21 }
 0x354   :  { %2465 = vrcp.f32 %v1204_v22  ;;  %v1216_v28 = vand.u32 2147483648, %v1204_v22  ;;  %vm1210_vm6 = vweird.f32 %v1204_v22  ;;  %v1214_v29 = vand.u32 2147483647, %v1204_v22 }
 0x356   :  { %v1217_v31 = vor.u32 1.1754944e-38, %v1216_v28  ;;  %vm1215_vm8 = vcmp.eq.f32.partialorder %v1214_v29, 8.507059e+37 }
 0x35a   :  { %v2466_v23 = vpop.eup %2465 }
 0x35b   :  { %v1206_v24 = vmul.f32 %v2466_v23, %v1204_v22  ;;  %vm1211_vm5 = vweird.f32 %v2466_v23 }
 0x35c   :  { %vm1212_vm7 = vmor %vm1210_vm6, %vm1211_vm5 }
 0x35d   :  { %v1207_v25 = vsub.f32 1.0, %v1206_v24 }
 0x35f   :  { %v1208_v26 = vmul.f32 %v2466_v23, %v1207_v25 }
 0x361   :  { %v1209_v27 = vadd.f32 %v2466_v23, %v1208_v26 }
 0x363   :  { %v1213_v30 = vsel %vm1212_vm7, %v2466_v23, %v1209_v27 }
 0x364   :  { %v1218_v33 = vsel %vm1215_vm8, %v1217_v31, %v1213_v30 }
 0x365   :  { %v1221_v35 = vmul.f32 0.0, %v1218_v33 }
 0x3c2   :  { %v1224_v32 = vpop.permute.xlu0 %1223 }
 0x3c3   :  { %v1226_v34 = vmul.f32 %v1224_v32, %v1218_v33 }
 0x3c5   :  { %1228 = vrot.lane.b32.xlu0 %v1226_v34, %s2751_s11 }
 0x437   :  { %v1229_v36 = vpop.permute.xlu0 %1228 }
 0x438   :  { %v3072_v37 = vadd.f32 %v1229_v36, %v1221_v35 }
 0x43a   :  { %2467 = vtanh.f32 %v3072_v37  ;;  %v1354_v34 = vrot.slane %v3072_v37, 6 }
 0x440   :  { %v2468_v38 = vpop.eup %2467 }
 0x441   :  { %1234 = vrot.lane.b32.xlu1 %v2468_v38, %s2750_s30 }
 0x4b3   :  { %v1235_v48 = vpop.permute.xlu1 %1234 }
 0x4b4   :  { %v1237_v50 = vmul.f32 %v1235_v48, %v1218_v33 }
 0x4b6   :  { %1239 = vrot.lane.b32.xlu1 %v1237_v50, %s2751_s11 }
 0x528   :  { %v1240_v52 = vpop.permute.xlu1 %1239 }
 0x529   :  { %v1242_v54 = vsel %vm451_vm4, %v1240_v52, 0.0  ;;  %2414 = vmatmul.msk.f32.vlgmr.msrb.gmra.mxu1 %vm451_vm4, %v1240_v52 }
 0x52a   :  { %2412 = vmatmul.msk.f32.vlgmr.msrb.gmra.mxu0 %vm1246_vm9, %v1242_v54  ;;  %1741 = vmatpush.msrb.mxu1 %v3032_v47 }
 0x52b   :  { %1873 = vmatpush.msrb.mxu0 %v3032_v47 }
 0x52c   :  { %1742 = vmatpush.msrb.mxu1 %v3036_v49 }
 0x52d   :  { %1874 = vmatpush.msrb.mxu0 %v3036_v49 }
 0x52e   :  { %1743 = vmatpush.msrb.mxu1 %v3039_v51 }
 0x52f   :  { %1875 = vmatpush.msrb.mxu0 %v3039_v51 }
 0x530   :  { %1744 = vmatpush.msrb.mxu1 %v3043_v53 }
 0x531   :  { %1876 = vmatpush.msrb.mxu0 %v3043_v53 }
 0x5a6   :  { %v1326_v56 = vpop.f32.mrf.mxu1 }
 0x5a7   :  { %v1267_v57 = vpop.f32.mrf.mxu0  ;;  %v1330_v59 = vrot.slane %v1326_v56, 6 }
 0x5a8   :  { %v1268_v58 = vadd.f32 %v3171_v55, %v1267_v57 }
 0x5a9   :  { %v1332_v60 = vadd.f32 %v1330_v59, %v3067_v17 }
 0x5aa   :  { %2469 = vtanh.f32 %v1268_v58  ;;  %v2413_v63 = vmul.f32 -1.442695, %v1268_v58 }
 0x5ab   :  { %2471 = vtanh.f32 %v1332_v60  ;;  %v2415_v0 = vmul.f32 -1.442695, %v1332_v60 }
 0x5ac   :  { %2473 = vpow2.f32 %v2413_v63 }
 0x5ad   :  { %2475 = vpow2.f32 %v2415_v0  ;;  %v3202_v0 = vpop.f32.mrf.mxu2 }
 0x5b0   :  { %v2470_v61 = vpop.eup %2469 }
 0x5b1   :  { %1292 = vrot.lane.b32.xlu2 %v2470_v61, %s2750_s30  ;;  %v2472_v62 = vpop.eup %2471 }
 0x5b2   :  { %v2474_v1 = vpop.eup %2473 }
 0x5b3   :  { %v1273_v2 = vadd.f32 1.0, %v2474_v1  ;;  %v2476_v3 = vpop.eup %2475 }
 0x5b4   :  { %v1336_v4 = vadd.f32 1.0, %v2476_v3 }
 0x5b5   :  { %2477 = vrcp.f32 %v1273_v2  ;;  %v1285_v13 = vand.u32 2147483648, %v1273_v2  ;;  %vm1279_vm11 = vweird.f32 %v1273_v2  ;;  %v1283_v15 = vand.u32 2147483647, %v1273_v2 }
 0x5b6   :  { %2479 = vrcp.f32 %v1336_v4  ;;  %v1348_v24 = vand.u32 2147483648, %v1336_v4  ;;  %vm1342_vm15 = vweird.f32 %v1336_v4  ;;  %v1346_v25 = vand.u32 2147483647, %v1336_v4 }
 0x5b7   :  { %v1286_v19 = vor.u32 1.1754944e-38, %v1285_v13  ;;  %vm1284_vm13 = vcmp.eq.f32.partialorder %v1283_v15, 8.507059e+37 }
 0x5b8   :  { %v1349_v27 = vor.u32 1.1754944e-38, %v1348_v24  ;;  %vm1347_vm1 = vcmp.eq.f32.partialorder %v1346_v25, 8.507059e+37 }
 0x5b9   :  { %1358 = vrot.lane.b32.xlu2 %v2472_v62, %s2750_s30 }
 0x5bb   :  { %v2478_v5 = vpop.eup %2477 }
 0x5bc   :  { %v1275_v6 = vmul.f32 %v2478_v5, %v1273_v2  ;;  %v2480_v8 = vpop.eup %2479  ;;  %vm1280_vm10 = vweird.f32 %v2478_v5 }
 0x5bd   :  { %v1338_v10 = vmul.f32 %v2480_v8, %v1336_v4  ;;  %vm1281_vm12 = vmor %vm1279_vm11, %vm1280_vm10  ;;  %vm1343_vm14 = vweird.f32 %v2480_v8 }
 0x5be   :  { %v1276_v7 = vsub.f32 1.0, %v1275_v6  ;;  %vm1344_vm0 = vmor %vm1342_vm15, %vm1343_vm14 }
 0x5bf   :  { %v1339_v12 = vsub.f32 1.0, %v1338_v10 }
 0x5c0   :  { %v1277_v9 = vmul.f32 %v2478_v5, %v1276_v7 }
 0x5c1   :  { %v1340_v18 = vmul.f32 %v2480_v8, %v1339_v12 }
 0x5c2   :  { %v1278_v11 = vadd.f32 %v2478_v5, %v1277_v9 }
 0x5c3   :  { %v1341_v23 = vadd.f32 %v2480_v8, %v1340_v18 }
 0x5c4   :  { %v1282_v16 = vsel %vm1281_vm12, %v2478_v5, %v1278_v11 }
 0x5c5   :  { %v1287_v21 = vsel %vm1284_vm13, %v1286_v19, %v1282_v16  ;;  %v1345_v26 = vsel %vm1344_vm0, %v2480_v8, %v1341_v23 }
 0x5c6   :  { %v1350_v28 = vsel %vm1347_vm1, %v1349_v27, %v1345_v26  ;;  %v1290_v31 = vmul.f32 0.0, %v1287_v21 }
 0x5c7   :  { %v1356_v35 = vmul.f32 %v1354_v34, %v1350_v28 }
 0x60b   :  { %v1293_v20 = vpop.permute.xlu2 %1292 }
 0x60c   :  { %v1295_v22 = vmul.f32 %v1293_v20, %v1287_v21 }
 0x60e   :  { %1297 = vrot.lane.b32.xlu0 %v1295_v22, %s2751_s11 }
 0x613   :  { %v1359_v29 = vpop.permute.xlu2 %1358 }
 0x614   :  { %v1361_v30 = vmul.f32 %v1359_v29, %v1350_v28 }
 0x616   :  { %1363 = vrot.lane.b32.xlu1 %v1361_v30, %s2751_s11 }
 0x680   :  { %v1298_v32 = vpop.permute.xlu0 %1297 }
 0x681   :  { %v3179_v33 = vadd.f32 %v1298_v32, %v1290_v31 }
 0x683   :  { %2481 = vtanh.f32 %v3179_v33 }
 0x688   :  { %v1364_v36 = vpop.permute.xlu1 %1363 }
 0x689   :  { %v2482_v38 = vpop.eup %2481  ;;  %v3183_v48 = vadd.f32 %v1364_v36, %v1356_v35 }
 0x68a   :  { %1303 = vrot.lane.b32.xlu2 %v2482_v38, %s2750_s30 }
 0x68b   :  { %2483 = vtanh.f32 %v3183_v48  ;;  %v1494_v38 = vrot.slane %v3183_v48, 6 }
 0x691   :  { %v2484_v50 = vpop.eup %2483 }
 0x692   :  { %1369 = vrot.lane.b32.xlu0 %v2484_v50, %s2750_s30 }
 0x6e4   :  { %v1304_v52 = vpop.permute.xlu2 %1303 }
 0x6e5   :  { %v1306_v54 = vmul.f32 %v1304_v52, %v1287_v21 }
 0x6e7   :  { %v1378_v56 = vrot.slane %v1306_v54, 6 }
 0x6e9   :  { %1379 = vrot.lane.b32.xlu2 %v1378_v56, %s2750_s30 }
 0x704   :  { %v1370_v57 = vpop.permute.xlu0 %1369 }
 0x705   :  { %v1372_v58 = vmul.f32 %v1370_v57, %v1350_v28 }
 0x707   :  { %v1444_v37 = vrot.slane %v1372_v58, 2  ;;  %1374 = vrot.lane.b32.xlu1 %v1372_v58, %s2751_s11 }
 0x709   :  { %1445 = vrot.lane.b32.xlu0 %v1444_v37, %s2751_s11 }
 0x743   :  { %v1380_v59 = vpop.permute.xlu2 %1379 }
 0x779   :  { %v1375_v60 = vpop.permute.xlu1 %1374 }
 0x77a   :  { %v1382_v61 = vsel %vm451_vm4, %v1375_v60, %v1380_v59 }
 0x77b   :  { %v1384_v62 = vrot.slane %v1382_v61, 2  ;;  %v1446_v63 = vpop.permute.xlu0 %1445 }
 0x77c   :  { %2418 = vmatmul.msk.f32.vlgmr.msra.gmra.mxu3 %vm451_vm4, %v1446_v63 }
 0x77d   :  { %2416 = vmatmul.msk.f32.vlgmr.msra.gmra.mxu2 %vm1246_vm9, %v1384_v62  ;;  %2013 = vmatpush.msra.mxu3 %v3032_v47 }
 0x77e   :  { %2153 = vmatpush.msra.mxu2 %v3032_v47 }
 0x77f   :  { %2014 = vmatpush.msra.mxu3 %v3036_v49 }
 0x780   :  { %2154 = vmatpush.msra.mxu2 %v3036_v49 }
 0x781   :  { %2015 = vmatpush.msra.mxu3 %v3039_v51 }
 0x782   :  { %2155 = vmatpush.msra.mxu2 %v3039_v51 }
 0x783   :  { %2016 = vmatpush.msra.mxu3 %v3043_v53 }
 0x784   :  { %2156 = vmatpush.msra.mxu2 %v3043_v53 }
 0x7ff   :  { %v1466_v1 = vpop.f32.mrf.mxu3 }
 0x800   :  { %v1470_v2 = vrot.slane %v1466_v1, 4  ;;  %v1404_v3 = vpop.f32.mrf.mxu2 }
 0x801   :  { %v1405_v4 = vadd.f32 %v3171_v55, %v1404_v3 }
 0x802   :  { %v1472_v47 = vadd.f32 %v1470_v2, %v3067_v17 }
 0x803   :  { %2485 = vtanh.f32 %v1405_v4  ;;  %v2417_v8 = vmul.f32 -1.442695, %v1405_v4 }
 0x804   :  { %2487 = vtanh.f32 %v1472_v47  ;;  %v2419_v51 = vmul.f32 -1.442695, %v1472_v47 }
 0x806   :  { %2489 = vpow2.f32 %v2419_v51 }
 0x809   :  { %v2486_v49 = vpop.eup %2485 }
 0x80a   :  { %v2488_v5 = vpop.eup %2487  ;;  %1429 = vrot.lane.b32.xlu1 %v2486_v49, %s2750_s30 }
 0x80b   :  { %1498 = vrot.lane.b32.xlu2 %v2488_v5, %s2750_s30 }
 0x80c   :  { %v2490_v53 = vpop.eup %2489 }
 0x80d   :  { %v1476_v6 = vadd.f32 1.0, %v2490_v53 }
 0x80f   :  { %2491 = vrcp.f32 %v1476_v6  ;;  %v1488_v16 = vand.u32 2147483648, %v1476_v6  ;;  %vm1482_vm3 = vweird.f32 %v1476_v6  ;;  %v1486_v18 = vand.u32 2147483647, %v1476_v6 }
 0x810   :  { %2493 = vpow2.f32 %v2417_v8 }
 0x811   :  { %v1489_v20 = vor.u32 1.1754944e-38, %v1488_v16  ;;  %vm1487_vm6 = vcmp.eq.f32.partialorder %v1486_v18, 8.507059e+37 }
 0x815   :  { %v2492_v7 = vpop.eup %2491 }
 0x816   :  { %v1478_v9 = vmul.f32 %v2492_v7, %v1476_v6  ;;  %v2494_v11 = vpop.eup %2493  ;;  %vm1483_vm2 = vweird.f32 %v2492_v7 }
 0x817   :  { %v1410_v13 = vadd.f32 1.0, %v2494_v11  ;;  %vm1484_vm5 = vmor %vm1482_vm3, %vm1483_vm2 }
 0x818   :  { %v1479_v10 = vsub.f32 1.0, %v1478_v9 }
 0x819   :  { %2495 = vrcp.f32 %v1410_v13  ;;  %v1422_v29 = vand.u32 2147483648, %v1410_v13  ;;  %vm1416_vm8 = vweird.f32 %v1410_v13  ;;  %v1420_v30 = vand.u32 2147483647, %v1410_v13 }
 0x81a   :  { %v1480_v12 = vmul.f32 %v2492_v7, %v1479_v10 }
 0x81b   :  { %v1423_v32 = vor.u32 1.1754944e-38, %v1422_v29  ;;  %vm1421_vm11 = vcmp.eq.f32.partialorder %v1420_v30, 8.507059e+37 }
 0x81c   :  { %v1481_v15 = vadd.f32 %v2492_v7, %v1480_v12 }
 0x81e   :  { %v1485_v19 = vsel %vm1484_vm5, %v2492_v7, %v1481_v15 }
 0x81f   :  { %v1490_v21 = vsel %vm1487_vm6, %v1489_v20, %v1485_v19  ;;  %v2496_v23 = vpop.eup %2495 }
 0x820   :  { %v1412_v25 = vmul.f32 %v2496_v23, %v1410_v13  ;;  %vm1417_vm7 = vweird.f32 %v2496_v23  ;;  %v1496_v50 = vmul.f32 %v1494_v38, %v1490_v21 }
 0x821   :  { %vm1418_vm10 = vmor %vm1416_vm8, %vm1417_vm7 }
 0x822   :  { %v1413_v26 = vsub.f32 1.0, %v1412_v25 }
 0x824   :  { %v1414_v27 = vmul.f32 %v2496_v23, %v1413_v26 }
 0x826   :  { %v1415_v28 = vadd.f32 %v2496_v23, %v1414_v27 }
 0x828   :  { %v1419_v31 = vsel %vm1418_vm10, %v2496_v23, %v1415_v28 }
 0x829   :  { %v1424_v35 = vsel %vm1421_vm11, %v1423_v32, %v1419_v31 }
 0x82a   :  { %v1427_v57 = vmul.f32 %v1424_v35, %v3179_v33 }
 0x865   :  { %v1499_v22 = vpop.permute.xlu2 %1498 }
 0x866   :  { %v1501_v24 = vmul.f32 %v1499_v22, %v1490_v21 }
 0x868   :  { %1503 = vrot.lane.b32.xlu1 %v1501_v24, %s2751_s11 }
 0x87c   :  { %v1430_v34 = vpop.permute.xlu1 %1429 }
 0x87d   :  { %v1432_v36 = vmul.f32 %v1430_v34, %v1424_v35 }
 0x87f   :  { %1434 = vrot.lane.b32.xlu0 %v1432_v36, %s2751_s11 }
 0x8da   :  { %v1504_v52 = vpop.permute.xlu1 %1503 }
 0x8db   :  { %v3211_v54 = vadd.f32 %v1504_v52, %v1496_v50 }
 0x8dd   :  { %2497 = vtanh.f32 %v3211_v54 }
 0x8e3   :  { %v2498_v56 = vpop.eup %2497 }
 0x8e4   :  { %1509 = vrot.lane.b32.xlu0 %v2498_v56, %s2750_s30 }
 0x8f1   :  { %v1435_v58 = vpop.permute.xlu0 %1434 }
 0x8f2   :  { %v3216_v37 = vadd.f32 %v1435_v58, %v1427_v57  ;;  %v1634_v57 = vrot.slane %v3211_v54, 6 }
 0x8f4   :  { %2499 = vtanh.f32 %v3216_v37 }
 0x8fa   :  { %v2500_v59 = vpop.eup %2499 }
 0x8fb   :  { %1440 = vrot.lane.b32.xlu2 %v2500_v59, %s2750_s30 }
 0x955   :  { %v1441_v48 = vpop.permute.xlu2 %1440 }
 0x956   :  { %v1443_v60 = vmul.f32 %v1441_v48, %v1424_v35  ;;  %v1510_v61 = vpop.permute.xlu0 %1509 }
 0x957   :  { %v1512_v62 = vmul.f32 %v1510_v61, %v1490_v21 }
 0x958   :  { %v1518_v63 = vrot.slane %v1443_v60, 4 }
 0x959   :  { %v1584_v1 = vrot.slane %v1512_v62, 4  ;;  %1514 = vrot.lane.b32.xlu1 %v1512_v62, %s2751_s11 }
 0x95a   :  { %1519 = vrot.lane.b32.xlu2 %v1518_v63, %s2750_s30 }
 0x95b   :  { %1585 = vrot.lane.b32.xlu0 %v1584_v1, %s2751_s11 }
 0x9b4   :  { %v1520_v33 = vpop.permute.xlu2 %1519 }
 0x9cb   :  { %v1515_v2 = vpop.permute.xlu1 %1514 }
 0x9cc   :  { %v1522_v3 = vsel %vm451_vm4, %v1515_v2, %v1520_v33 }
 0x9cd   :  { %v1524_v4 = vrot.slane %v1522_v3, 4  ;;  %v1586_v47 = vpop.permute.xlu0 %1585 }
 0x9ce   :  { %2422 = vmatmul.msk.f32.vlgmr.msra.gmra.mxu1 %vm451_vm4, %v1586_v47 }
 0x9cf   :  { %2420 = vmatmul.msk.f32.vlgmr.msra.gmra.mxu0 %vm1246_vm9, %v1524_v4  ;;  %1947 = vmatpush.msra.mxu1 %v3079_v39 }
 0x9d0   :  { %2087 = vmatpush.msra.mxu0 %v3079_v39 }
 0x9d1   :  { %1948 = vmatpush.msra.mxu1 %v3084_v40 }
 0x9d2   :  { %2088 = vmatpush.msra.mxu0 %v3084_v40 }
 0x9d3   :  { %1949 = vmatpush.msra.mxu1 %v3091_v41 }
 0x9d4   :  { %2089 = vmatpush.msra.mxu0 %v3091_v41 }
 0x9d5   :  { %1950 = vmatpush.msra.mxu1 %v3099_v42 }
 0x9d6   :  { %2090 = vmatpush.msra.mxu0 %v3099_v42 }
 0x9d7   :  { %1951 = vmatpush.msra.mxu1 %v3107_v43 }
 0x9d8   :  { %2091 = vmatpush.msra.mxu0 %v3107_v43 }
 0x9d9   :  { %1952 = vmatpush.msra.mxu1 %v3115_v44 }
 0x9da   :  { %2092 = vmatpush.msra.mxu0 %v3115_v44 }
 0x9db   :  { %1953 = vmatpush.msra.mxu1 %v3123_v45 }
 0x9dc   :  { %2093 = vmatpush.msra.mxu0 %v3123_v45 }
 0x9dd   :  { %1954 = vmatpush.msra.mxu1 %v3131_v46 }
 0x9de   :  { %2094 = vmatpush.msra.mxu0 %v3131_v46 }
 0xa4b   :  { %v1606_v49 = vpop.f32.mrf.mxu1 }
 0xa4c   :  { %v1610_v5 = vrot.slane %v1606_v49, 2  ;;  %v1544_v51 = vpop.f32.mrf.mxu0 }
 0xa4d   :  { %v1545_v53 = vadd.f32 %v3171_v55, %v1544_v51 }
 0xa4e   :  { %v1612_v6 = vadd.f32 %v1610_v5, %v3067_v17 }
 0xa4f   :  { %2501 = vtanh.f32 %v1545_v53  ;;  %v2421_v13 = vmul.f32 -1.442695, %v1545_v53 }
 0xa50   :  { %2503 = vtanh.f32 %v1612_v6  ;;  %v2423_v9 = vmul.f32 -1.442695, %v1612_v6  ;;  %v3274_v6 = vadd.f32 %v3064_v14, %v3202_v0 }
 0xa52   :  { %2505 = vpow2.f32 %v2423_v9 }
 0xa55   :  { %v2502_v7 = vpop.eup %2501 }
 0xa56   :  { %v2504_v8 = vpop.eup %2503  ;;  %1569 = vrot.lane.b32.xlu1 %v2502_v7, %s2750_s30 }
 0xa57   :  { %1638 = vrot.lane.b32.xlu2 %v2504_v8, %s2750_s30 }
 0xa58   :  { %v2506_v10 = vpop.eup %2505 }
 0xa59   :  { %v1616_v11 = vadd.f32 1.0, %v2506_v10 }
 0xa5b   :  { %2507 = vrcp.f32 %v1616_v11  ;;  %v1628_v21 = vand.u32 2147483648, %v1616_v11  ;;  %vm1622_vm13 = vweird.f32 %v1616_v11  ;;  %v1626_v22 = vand.u32 2147483647, %v1616_v11 }
 0xa5c   :  { %2509 = vpow2.f32 %v2421_v13 }
 0xa5d   :  { %v1629_v24 = vor.u32 1.1754944e-38, %v1628_v21  ;;  %vm1627_vm15 = vcmp.eq.f32.partialorder %v1626_v22, 8.507059e+37 }
 0xa61   :  { %v2508_v12 = vpop.eup %2507 }
 0xa62   :  { %v1618_v15 = vmul.f32 %v2508_v12, %v1616_v11  ;;  %v2510_v18 = vpop.eup %2509  ;;  %vm1623_vm12 = vweird.f32 %v2508_v12 }
 0xa63   :  { %v1550_v19 = vadd.f32 1.0, %v2510_v18  ;;  %vm1624_vm14 = vmor %vm1622_vm13, %vm1623_vm12 }
 0xa64   :  { %v1619_v16 = vsub.f32 1.0, %v1618_v15 }
 0xa65   :  { %2511 = vrcp.f32 %v1550_v19  ;;  %v1562_v34 = vand.u32 2147483648, %v1550_v19  ;;  %vm1556_vm1 = vweird.f32 %v1550_v19  ;;  %v1560_v35 = vand.u32 2147483647, %v1550_v19 }
 0xa66   :  { %v1620_v17 = vmul.f32 %v2508_v12, %v1619_v16 }
 0xa67   :  { %v1563_v38 = vor.u32 1.1754944e-38, %v1562_v34  ;;  %vm1561_vm3 = vcmp.eq.f32.partialorder %v1560_v35, 8.507059e+37 }
 0xa68   :  { %v1621_v20 = vadd.f32 %v2508_v12, %v1620_v17 }
 0xa6a   :  { %v1625_v23 = vsel %vm1624_vm14, %v2508_v12, %v1621_v20 }
 0xa6b   :  { %v1630_v25 = vsel %vm1627_vm15, %v1629_v24, %v1625_v23  ;;  %v2512_v27 = vpop.eup %2511 }
 0xa6c   :  { %v1552_v29 = vmul.f32 %v2512_v27, %v1550_v19  ;;  %vm1557_vm0 = vweird.f32 %v2512_v27  ;;  %v1636_v58 = vmul.f32 %v1634_v57, %v1630_v25 }
 0xa6d   :  { %vm1558_vm2 = vmor %vm1556_vm1, %vm1557_vm0 }
 0xa6e   :  { %v1553_v30 = vsub.f32 1.0, %v1552_v29 }
 0xa70   :  { %v1554_v31 = vmul.f32 %v2512_v27, %v1553_v30 }
 0xa72   :  { %v1555_v32 = vadd.f32 %v2512_v27, %v1554_v31 }
 0xa74   :  { %v1559_v36 = vsel %vm1558_vm2, %v2512_v27, %v1555_v32 }
 0xa75   :  { %v1564_v52 = vsel %vm1561_vm3, %v1563_v38, %v1559_v36 }
 0xa76   :  { %v1567_v61 = vmul.f32 %v1564_v52, %v3216_v37 }
 0xab1   :  { %v1639_v26 = vpop.permute.xlu2 %1638 }
 0xab2   :  { %v1641_v28 = vmul.f32 %v1639_v26, %v1630_v25 }
 0xab4   :  { %1643 = vrot.lane.b32.xlu1 %v1641_v28, %s2751_s11 }
 0xac8   :  { %v1570_v50 = vpop.permute.xlu1 %1569 }
 0xac9   :  { %v1572_v56 = vmul.f32 %v1570_v50, %v1564_v52 }
 0xacb   :  { %1574 = vrot.lane.b32.xlu0 %v1572_v56, %s2751_s11 }
 0xb26   :  { %v1644_v59 = vpop.permute.xlu1 %1643 }
 0xb27   :  { %v3249_v48 = vadd.f32 %v1644_v59, %v1636_v58 }
 0xb29   :  { %2513 = vtanh.f32 %v3249_v48 }
 0xb2f   :  { %v2514_v60 = vpop.eup %2513 }
 0xb30   :  { %1649 = vrot.lane.b32.xlu0 %v2514_v60, %s2750_s30 }
 0xb3d   :  { %v1575_v62 = vpop.permute.xlu0 %1574 }
 0xb3e   :  { %v3254_v63 = vadd.f32 %v1575_v62, %v1567_v61 }
 0xb40   :  { %2515 = vtanh.f32 %v3254_v63 }
 0xb46   :  { %v2516_v1 = vpop.eup %2515 }
 0xb47   :  { %1580 = vrot.lane.b32.xlu2 %v2516_v1, %s2750_s30 }
 0xba1   :  { %v1581_v54 = vpop.permute.xlu2 %1580 }
 0xba2   :  { %v1583_v33 = vmul.f32 %v1581_v54, %v1564_v52  ;;  %v1650_v2 = vpop.permute.xlu0 %1649  ;;  %v1771_v52 = vrot.slane %v3249_v48, 6 }
 0xba3   :  { %v1652_v3 = vmul.f32 %v1650_v2, %v1630_v25 }
 0xba4   :  { %v1658_v4 = vrot.slane %v1583_v33, 2 }
 0xba5   :  { %v1724_v47 = vrot.slane %v1652_v3, 6  ;;  %1654 = vrot.lane.b32.xlu1 %v1652_v3, %s2751_s11 }
 0xba6   :  { %1659 = vrot.lane.b32.xlu2 %v1658_v4, %s2750_s30 }
 0xba7   :  { %1725 = vrot.lane.b32.xlu0 %v1724_v47, %s2751_s11 }
 0xc00   :  { %v1660_v37 = vpop.permute.xlu2 %1659 }
 0xc17   :  { %v1655_v49 = vpop.permute.xlu1 %1654 }
 0xc18   :  { %v1662_v5 = vsel %vm451_vm4, %v1655_v49, %v1660_v37 }
 0xc19   :  { %v1664_v51 = vrot.slane %v1662_v5, 6  ;;  %v1726_v53 = vpop.permute.xlu0 %1725 }
 0xc1a   :  { %2426 = vmatmul.msk.f32.vlgmr.msrb.gmra.mxu1 %vm451_vm4, %v1726_v53 }
 0xc1b   :  { %2424 = vmatmul.msk.f32.vlgmr.msrb.gmra.mxu3 %vm1246_vm9, %v1664_v51 }
 0xc1c   :  { %2227 = vmatpush.msrb.mxu3 %v3079_v39 }
 0xc1e   :  { %2228 = vmatpush.msrb.mxu3 %v3084_v40 }
 0xc20   :  { %2229 = vmatpush.msrb.mxu3 %v3091_v41 }
 0xc22   :  { %2230 = vmatpush.msrb.mxu3 %v3099_v42 }
 0xc24   :  { %2231 = vmatpush.msrb.mxu3 %v3107_v43 }
 0xc26   :  { %2232 = vmatpush.msrb.mxu3 %v3115_v44 }
 0xc28   :  { %2233 = vmatpush.msrb.mxu3 %v3123_v45 }
 0xc2a   :  { %2234 = vmatpush.msrb.mxu3 %v3131_v46 }
 0xc97   :  { %v1746_v7 = vpop.f32.mrf.mxu1 }
 0xc98   :  { %v1749_v39 = vadd.f32 %v1746_v7, %v3274_v6 }
 0xc9a   :  { %2517 = vtanh.f32 %v1749_v39  ;;  %v2427_v14 = vmul.f32 -1.442695, %v1749_v39 }
 0xc9e   :  { %v1684_v40 = vpop.f32.mrf.mxu3 }
 0xc9f   :  { %v1685_v41 = vadd.f32 %v3171_v55, %v1684_v40 }
 0xca0   :  { %v2518_v42 = vpop.eup %2517 }
 0xca1   :  { %2519 = vtanh.f32 %v1685_v41  ;;  %1775 = vrot.lane.b32.xlu1 %v2518_v42, %s2750_s30  ;;  %v2425_v44 = vmul.f32 -1.442695, %v1685_v41 }
 0xca3   :  { %2521 = vpow2.f32 %v2425_v44 }
 0xca7   :  { %v2520_v43 = vpop.eup %2519 }
 0xca8   :  { %1709 = vrot.lane.b32.xlu2 %v2520_v43, %s2750_s30 }
 0xca9   :  { %v2522_v45 = vpop.eup %2521 }
 0xcaa   :  { %v1690_v46 = vadd.f32 1.0, %v2522_v45 }
 0xcac   :  { %2523 = vrcp.f32 %v1690_v46  ;;  %v1702_v15 = vand.u32 2147483648, %v1690_v46  ;;  %vm1696_vm6 = vweird.f32 %v1690_v46  ;;  %v1700_v18 = vand.u32 2147483647, %v1690_v46 }
 0xcad   :  { %2525 = vpow2.f32 %v2427_v14 }
 0xcae   :  { %v1703_v19 = vor.u32 1.1754944e-38, %v1702_v15  ;;  %vm1701_vm8 = vcmp.eq.f32.partialorder %v1700_v18, 8.507059e+37 }
 0xcb2   :  { %v2524_v0 = vpop.eup %2523 }
 0xcb3   :  { %v1692_v8 = vmul.f32 %v2524_v0, %v1690_v46  ;;  %v2526_v9 = vpop.eup %2525  ;;  %vm1697_vm5 = vweird.f32 %v2524_v0 }
 0xcb4   :  { %v1753_v10 = vadd.f32 1.0, %v2526_v9  ;;  %vm1698_vm7 = vmor %vm1696_vm6, %vm1697_vm5 }
 0xcb5   :  { %v1693_v11 = vsub.f32 1.0, %v1692_v8 }
 0xcb6   :  { %2527 = vrcp.f32 %v1753_v10  ;;  %v1765_v27 = vand.u32 2147483648, %v1753_v10  ;;  %vm1759_vm11 = vweird.f32 %v1753_v10  ;;  %v1763_v28 = vand.u32 2147483647, %v1753_v10 }
 0xcb7   :  { %v1694_v12 = vmul.f32 %v2524_v0, %v1693_v11 }
 0xcb8   :  { %v1766_v30 = vor.u32 1.1754944e-38, %v1765_v27  ;;  %vm1764_vm13 = vcmp.eq.f32.partialorder %v1763_v28, 8.507059e+37 }
 0xcb9   :  { %v1695_v13 = vadd.f32 %v2524_v0, %v1694_v12 }
 0xcbb   :  { %v1699_v17 = vsel %vm1698_vm7, %v2524_v0, %v1695_v13 }
 0xcbc   :  { %v2528_v16 = vpop.eup %2527  ;;  %v1704_v22 = vsel %vm1701_vm8, %v1703_v19, %v1699_v17 }
 0xcbd   :  { %v1755_v20 = vmul.f32 %v2528_v16, %v1753_v10  ;;  %vm1760_vm10 = vweird.f32 %v2528_v16  ;;  %v1707_v35 = vmul.f32 %v1704_v22, %v3254_v63 }
 0xcbe   :  { %vm1761_vm12 = vmor %vm1759_vm11, %vm1760_vm10 }
 0xcbf   :  { %v1756_v24 = vsub.f32 1.0, %v1755_v20 }
 0xcc1   :  { %v1757_v25 = vmul.f32 %v2528_v16, %v1756_v24 }
 0xcc3   :  { %v1758_v26 = vadd.f32 %v2528_v16, %v1757_v25 }
 0xcc5   :  { %v1762_v29 = vsel %vm1761_vm12, %v2528_v16, %v1758_v26 }
 0xcc6   :  { %v1767_v32 = vsel %vm1764_vm13, %v1766_v30, %v1762_v29 }
 0xcc7   :  { %v1773_v56 = vmul.f32 %v1771_v52, %v1767_v32 }
 0xd02   :  { %v1710_v21 = vpop.permute.xlu2 %1709 }
 0xd03   :  { %v1712_v23 = vmul.f32 %v1710_v21, %v1704_v22 }
 0xd05   :  { %1714 = vrot.lane.b32.xlu1 %v1712_v23, %s2751_s11 }
 0xd13   :  { %v1776_v31 = vpop.permute.xlu1 %1775 }
 0xd14   :  { %v1778_v34 = vmul.f32 %v1776_v31, %v1767_v32 }
 0xd16   :  { %1780 = vrot.lane.b32.xlu0 %v1778_v34, %s2751_s11 }
 0xd77   :  { %v1715_v36 = vpop.permute.xlu1 %1714 }
 0xd78   :  { %v3283_v38 = vadd.f32 %v1715_v36, %v1707_v35 }
 0xd7a   :  { %2529 = vtanh.f32 %v3283_v38 }
 0xd80   :  { %v2530_v50 = vpop.eup %2529 }
 0xd81   :  { %1720 = vrot.lane.b32.xlu0 %v2530_v50, %s2750_s30 }
 0xd88   :  { %v1781_v57 = vpop.permute.xlu0 %1780 }
 0xd89   :  { %v3288_v58 = vadd.f32 %v1781_v57, %v1773_v56 }
 0xd8b   :  { %2531 = vtanh.f32 %v3288_v58  ;;  %v1906_v25 = vrot.slane %v3288_v58, 6 }
 0xd91   :  { %v2532_v59 = vpop.eup %2531 }
 0xd92   :  { %1786 = vrot.lane.b32.xlu2 %v2532_v59, %s2750_s30 }
 0xdec   :  { %v1787_v60 = vpop.permute.xlu2 %1786 }
 0xded   :  { %v1789_v61 = vmul.f32 %v1787_v60, %v1767_v32 }
 0xdef   :  { %1791 = vrot.lane.b32.xlu1 %v1789_v61, %s2751_s11 }
 0xdf3   :  { %v1721_v62 = vpop.permute.xlu0 %1720 }
 0xdf4   :  { %v1723_v63 = vmul.f32 %v1721_v62, %v1704_v22 }
 0xdf6   :  { %1795 = vrot.lane.b32.xlu2 %v1723_v63, %s2750_s30 }
 0xe50   :  { %v1796_v1 = vpop.permute.xlu2 %1795 }
 0xe61   :  { %v1792_v54 = vpop.permute.xlu1 %1791 }
 0xe62   :  { %v1798_v48 = vsel %vm451_vm4, %v1792_v54, %v1796_v1  ;;  %2430 = vmatmul.msk.f32.vlgmr.msrb.gmra.mxu0 %vm451_vm4, %v1792_v54 }
 0xe63   :  { %2428 = vmatmul.msk.f32.vlgmr.msrb.gmra.mxu2 %vm1246_vm9, %v1798_v48 }
 0xedf   :  { %v1878_v33 = vpop.f32.mrf.mxu0 }
 0xee0   :  { %v1882_v2 = vrot.slane %v1878_v33, 6 }
 0xee2   :  { %v1884_v3 = vadd.f32 %v1882_v2, %v3274_v6 }
 0xee4   :  { %2533 = vtanh.f32 %v1884_v3  ;;  %v2431_v5 = vmul.f32 -1.442695, %v1884_v3 }
 0xee6   :  { %v1819_v4 = vpop.f32.mrf.mxu2 }
 0xee7   :  { %v1820_v47 = vadd.f32 %v3171_v55, %v1819_v4 }
 0xee9   :  { %2535 = vtanh.f32 %v1820_v47  ;;  %v2429_v51 = vmul.f32 -1.442695, %v1820_v47 }
 0xeea   :  { %v2534_v37 = vpop.eup %2533  ;;  %2537 = vpow2.f32 %v2431_v5 }
 0xeeb   :  { %1910 = vrot.lane.b32.xlu0 %v2534_v37, %s2750_s30  ;;  %2539 = vpow2.f32 %v2429_v51 }
 0xeef   :  { %v2536_v49 = vpop.eup %2535 }
 0xef0   :  { %1844 = vrot.lane.b32.xlu1 %v2536_v49, %s2750_s30  ;;  %v2538_v53 = vpop.eup %2537 }
 0xef1   :  { %v1888_v7 = vadd.f32 1.0, %v2538_v53  ;;  %v2540_v39 = vpop.eup %2539 }
 0xef2   :  { %v1825_v40 = vadd.f32 1.0, %v2540_v39 }
 0xef3   :  { %2541 = vrcp.f32 %v1888_v7  ;;  %v1900_v8 = vand.u32 2147483648, %v1888_v7  ;;  %vm1894_vm15 = vweird.f32 %v1888_v7  ;;  %v1898_v10 = vand.u32 2147483647, %v1888_v7 }
 0xef4   :  { %2543 = vrcp.f32 %v1825_v40  ;;  %v1837_v15 = vand.u32 2147483648, %v1825_v40  ;;  %vm1831_vm3 = vweird.f32 %v1825_v40  ;;  %v1835_v17 = vand.u32 2147483647, %v1825_v40 }
 0xef5   :  { %v1901_v12 = vor.u32 1.1754944e-38, %v1900_v8  ;;  %vm1899_vm2 = vcmp.eq.f32.partialorder %v1898_v10, 8.507059e+37 }
 0xef6   :  { %v1838_v21 = vor.u32 1.1754944e-38, %v1837_v15  ;;  %vm1836_vm6 = vcmp.eq.f32.partialorder %v1835_v17, 8.507059e+37 }
 0xef9   :  { %v2542_v41 = vpop.eup %2541 }
 0xefa   :  { %v1890_v42 = vmul.f32 %v2542_v41, %v1888_v7  ;;  %v2544_v43 = vpop.eup %2543  ;;  %vm1895_vm14 = vweird.f32 %v2542_v41 }
 0xefb   :  { %v1827_v45 = vmul.f32 %v2544_v43, %v1825_v40  ;;  %vm1896_vm0 = vmor %vm1894_vm15, %vm1895_vm14  ;;  %vm1832_vm1 = vweird.f32 %v2544_v43 }
 0xefc   :  { %v1891_v44 = vsub.f32 1.0, %v1890_v42  ;;  %vm1833_vm5 = vmor %vm1831_vm3, %vm1832_vm1 }
 0xefd   :  { %v1828_v14 = vsub.f32 1.0, %v1827_v45 }
 0xefe   :  { %v1892_v46 = vmul.f32 %v2542_v41, %v1891_v44 }
 0xeff   :  { %v1829_v9 = vmul.f32 %v2544_v43, %v1828_v14 }
 0xf00   :  { %v1893_v0 = vadd.f32 %v2542_v41, %v1892_v46 }
 0xf01   :  { %v1830_v13 = vadd.f32 %v2544_v43, %v1829_v9 }
 0xf02   :  { %v1897_v11 = vsel %vm1896_vm0, %v2542_v41, %v1893_v0 }
 0xf03   :  { %v1902_v18 = vsel %vm1899_vm2, %v1901_v12, %v1897_v11  ;;  %v1834_v20 = vsel %vm1833_vm5, %v2544_v43, %v1830_v13 }
 0xf04   :  { %v1839_v23 = vsel %vm1836_vm6, %v1838_v21, %v1834_v20  ;;  %v1908_v26 = vmul.f32 %v1906_v25, %v1902_v18 }
 0xf05   :  { %v1842_v30 = vmul.f32 %v1839_v23, %v3283_v38 }
 0xf5d   :  { %v1911_v16 = vpop.permute.xlu0 %1910 }
 0xf5e   :  { %v1913_v19 = vmul.f32 %v1911_v16, %v1902_v18 }
 0xf60   :  { %1915 = vrot.lane.b32.xlu2 %v1913_v19, %s2751_s11 }
 0xf62   :  { %v1845_v22 = vpop.permute.xlu1 %1844 }
 0xf63   :  { %v1847_v24 = vmul.f32 %v1845_v22, %v1839_v23 }
 0xf65   :  { %1849 = vrot.lane.b32.xlu0 %v1847_v24, %s2751_s11 }
 0xfba   :  { %v1916_v27 = vpop.permute.xlu2 %1915 }
 0xfbb   :  { %v3304_v28 = vadd.f32 %v1916_v27, %v1908_v26 }
 0xfbd   :  { %2545 = vtanh.f32 %v3304_v28  ;;  %v2046_v19 = vrot.slane %v3304_v28, 6 }
 0xfc3   :  { %v2546_v29 = vpop.eup %2545 }
 0xfc4   :  { %1921 = vrot.lane.b32.xlu1 %v2546_v29, %s2750_s30 }
 0xfd7   :  { %v1850_v31 = vpop.permute.xlu0 %1849 }
 0xfd8   :  { %v3309_v32 = vadd.f32 %v1850_v31, %v1842_v30 }
 0xfda   :  { %2547 = vtanh.f32 %v3309_v32 }
 0xfe0   :  { %v2548_v34 = vpop.eup %2547 }
 0xfe1   :  { %1855 = vrot.lane.b32.xlu2 %v2548_v34, %s2750_s30 }
0x1036   :  { %v1922_v35 = vpop.permute.xlu1 %1921 }
0x1037   :  { %v1924_v36 = vmul.f32 %v1922_v35, %v1902_v18 }
0x1039   :  { %v1996_v50 = vrot.slane %v1924_v36, 2  ;;  %1926 = vrot.lane.b32.xlu1 %v1924_v36, %s2751_s11 }
0x103b   :  { %1997 = vrot.lane.b32.xlu0 %v1996_v50, %s2751_s11  ;;  %v1856_v52 = vpop.permute.xlu2 %1855 }
0x103c   :  { %v1858_v56 = vmul.f32 %v1856_v52, %v1839_v23 }
0x103e   :  { %v1930_v57 = vrot.slane %v1858_v56, 6 }
0x1040   :  { %1931 = vrot.lane.b32.xlu2 %v1930_v57, %s2750_s30 }
0x109a   :  { %v1932_v38 = vpop.permute.xlu2 %1931 }
0x10ab   :  { %v1927_v58 = vpop.permute.xlu1 %1926 }
0x10ac   :  { %v1934_v59 = vsel %vm451_vm4, %v1927_v58, %v1932_v38  ;;  %v3344_v38 = vld [vmem:[%s3397_s13] ss:$0 sm:$0xff] }
0x10ad   :  { %v1936_v60 = vrot.slane %v1934_v59, 2  ;;  %v1998_v61 = vpop.permute.xlu0 %1997 }
0x10ae   :  { %2434 = vmatmul.msk.f32.vlgmr.msra.gmra.mxu3 %vm451_vm4, %v1998_v61 }
0x10af   :  { %2432 = vmatmul.msk.f32.vlgmr.msra.gmra.mxu1 %vm1246_vm9, %v1936_v60 }
0x112c   :  { %v1956_v62 = vpop.f32.mrf.mxu1 }
0x112d   :  { %v1957_v63 = vadd.f32 %v3171_v55, %v1956_v62 }
0x112f   :  { %2549 = vtanh.f32 %v1957_v63  ;;  %v2433_v3 = vmul.f32 -1.442695, %v1957_v63 }
0x1131   :  { %v2018_v1 = vpop.f32.mrf.mxu3 }
0x1132   :  { %v2022_v54 = vrot.slane %v2018_v1, 4 }
0x1134   :  { %v2024_v48 = vadd.f32 %v2022_v54, %v3274_v6 }
0x1135   :  { %v2550_v33 = vpop.eup %2549 }
0x1136   :  { %2551 = vtanh.f32 %v2024_v48  ;;  %1981 = vrot.lane.b32.xlu1 %v2550_v33, %s2750_s30  ;;  %v2435_v4 = vmul.f32 -1.442695, %v2024_v48 }
0x1137   :  { %2553 = vpow2.f32 %v2433_v3 }
0x1138   :  { %2555 = vpow2.f32 %v2435_v4 }
0x113c   :  { %v2552_v2 = vpop.eup %2551 }
0x113d   :  { %2050 = vrot.lane.b32.xlu0 %v2552_v2, %s2750_s30  ;;  %v2554_v47 = vpop.eup %2553 }
0x113e   :  { %v1962_v37 = vadd.f32 1.0, %v2554_v47  ;;  %v2556_v49 = vpop.eup %2555 }
0x113f   :  { %v2028_v55 = vadd.f32 1.0, %v2556_v49 }
0x1140   :  { %2557 = vrcp.f32 %v1962_v37  ;;  %v1974_v43 = vand.u32 2147483648, %v1962_v37  ;;  %vm1968_vm8 = vweird.f32 %v1962_v37  ;;  %v1972_v44 = vand.u32 2147483647, %v1962_v37 }
0x1141   :  { %2559 = vrcp.f32 %v2028_v55  ;;  %v2040_v11 = vand.u32 2147483648, %v2028_v55  ;;  %vm2034_vm13 = vweird.f32 %v2028_v55  ;;  %v2038_v12 = vand.u32 2147483647, %v2028_v55 }
0x1142   :  { %v1975_v14 = vor.u32 1.1754944e-38, %v1974_v43  ;;  %vm1973_vm11 = vcmp.eq.f32.partialorder %v1972_v44, 8.507059e+37 }
0x1143   :  { %v2041_v15 = vor.u32 1.1754944e-38, %v2040_v11  ;;  %vm2039_vm15 = vcmp.eq.f32.partialorder %v2038_v12, 8.507059e+37 }
0x1146   :  { %v2558_v5 = vpop.eup %2557 }
0x1147   :  { %v1964_v51 = vmul.f32 %v2558_v5, %v1962_v37  ;;  %v2560_v53 = vpop.eup %2559  ;;  %vm1969_vm7 = vweird.f32 %v2558_v5 }
0x1148   :  { %v2030_v39 = vmul.f32 %v2560_v53, %v2028_v55  ;;  %vm1970_vm10 = vmor %vm1968_vm8, %vm1969_vm7  ;;  %vm2035_vm12 = vweird.f32 %v2560_v53 }
0x1149   :  { %v1965_v7 = vsub.f32 1.0, %v1964_v51  ;;  %vm2036_vm14 = vmor %vm2034_vm13, %vm2035_vm12  ;;  %vm2309_vm13 = vcmask 41984  }
0x114a   :  { %v2031_v41 = vsub.f32 1.0, %v2030_v39 }
0x114b   :  { %v1966_v40 = vmul.f32 %v2558_v5, %v1965_v7 }
0x114c   :  { %v2032_v45 = vmul.f32 %v2560_v53, %v2031_v41 }
0x114d   :  { %v1967_v42 = vadd.f32 %v2558_v5, %v1966_v40 }
0x114e   :  { %v2033_v9 = vadd.f32 %v2560_v53, %v2032_v45 }
0x114f   :  { %v1971_v46 = vsel %vm1970_vm10, %v2558_v5, %v1967_v42 }
0x1150   :  { %v1976_v8 = vsel %vm1973_vm11, %v1975_v14, %v1971_v46  ;;  %v2037_v13 = vsel %vm2036_vm14, %v2560_v53, %v2033_v9 }
0x1151   :  { %v2042_v18 = vsel %vm2039_vm15, %v2041_v15, %v2037_v13  ;;  %v1979_v24 = vmul.f32 %v1976_v8, %v3309_v32 }
0x1152   :  { %v2048_v20 = vmul.f32 %v2046_v19, %v2042_v18 }
0x11a8   :  { %v1982_v0 = vpop.permute.xlu1 %1981 }
0x11a9   :  { %v1984_v10 = vmul.f32 %v1982_v0, %v1976_v8 }
0x11ab   :  { %1986 = vrot.lane.b32.xlu0 %v1984_v10, %s2751_s11 }
0x11af   :  { %v2051_v16 = vpop.permute.xlu0 %2050 }
0x11b0   :  { %v2053_v17 = vmul.f32 %v2051_v16, %v2042_v18 }
0x11b2   :  { %2055 = vrot.lane.b32.xlu2 %v2053_v17, %s2751_s11 }
0x120c   :  { %v2056_v21 = vpop.permute.xlu2 %2055 }
0x120d   :  { %v3326_v22 = vadd.f32 %v2056_v21, %v2048_v20 }
0x120f   :  { %2561 = vtanh.f32 %v3326_v22 }
0x1215   :  { %v2562_v23 = vpop.eup %2561 }
0x1216   :  { %2061 = vrot.lane.b32.xlu1 %v2562_v23, %s2750_s30 }
0x121d   :  { %v1987_v25 = vpop.permute.xlu0 %1986 }
0x121e   :  { %v3331_v26 = vadd.f32 %v1987_v25, %v1979_v24 }
0x1220   :  { %2563 = vtanh.f32 %v3331_v26 }
0x1226   :  { %v2564_v27 = vpop.eup %2563 }
0x1227   :  { %1992 = vrot.lane.b32.xlu2 %v2564_v27, %s2750_s30 }
0x1281   :  { %v1993_v28 = vpop.permute.xlu2 %1992 }
0x1282   :  { %v1995_v29 = vmul.f32 %v1993_v28, %v1976_v8 }
0x1284   :  { %v2070_v30 = vrot.slane %v1995_v29, 4 }
0x1286   :  { %2071 = vrot.lane.b32.xlu2 %v2070_v30, %s2750_s30 }
0x1288   :  { %v2062_v31 = vpop.permute.xlu1 %2061 }
0x1289   :  { %v2064_v34 = vmul.f32 %v2062_v31, %v2042_v18  ;;  %v2186_v18 = vrot.slane %v3326_v22, 6 }
0x128b   :  { %v2136_v35 = vrot.slane %v2064_v34, 4  ;;  %2066 = vrot.lane.b32.xlu1 %v2064_v34, %s2751_s11 }
0x128d   :  { %2137 = vrot.lane.b32.xlu0 %v2136_v35, %s2751_s11 }
0x12e0   :  { %v2072_v32 = vpop.permute.xlu2 %2071 }
0x12fd   :  { %v2067_v36 = vpop.permute.xlu1 %2066 }
0x12fe   :  { %v2074_v50 = vsel %vm451_vm4, %v2067_v36, %v2072_v32 }
0x12ff   :  { %v2076_v52 = vrot.slane %v2074_v50, 4  ;;  %v2138_v56 = vpop.permute.xlu0 %2137 }
0x1300   :  { %2438 = vmatmul.msk.f32.vlgmr.msra.gmra.mxu2 %vm451_vm4, %v2138_v56 }
0x1301   :  { %2436 = vmatmul.msk.f32.vlgmr.msra.gmra.mxu0 %vm1246_vm9, %v2076_v52 }
0x137e   :  { %v2096_v57 = vpop.f32.mrf.mxu0 }
0x137f   :  { %v2097_v58 = vadd.f32 %v3344_v38, %v2096_v57 }
0x1381   :  { %2565 = vtanh.f32 %v2097_v58  ;;  %v2437_v1 = vmul.f32 -1.442695, %v2097_v58 }
0x1383   :  { %v2158_v59 = vpop.f32.mrf.mxu2 }
0x1384   :  { %v2162_v60 = vrot.slane %v2158_v59, 2 }
0x1386   :  { %v2164_v61 = vadd.f32 %v2162_v60, %v3274_v6 }
0x1387   :  { %v2566_v62 = vpop.eup %2565 }
0x1388   :  { %2567 = vtanh.f32 %v2164_v61  ;;  %2121 = vrot.lane.b32.xlu0 %v2566_v62, %s2750_s30  ;;  %v2439_v54 = vmul.f32 -1.442695, %v2164_v61 }
0x1389   :  { %2569 = vpow2.f32 %v2437_v1 }
0x138a   :  { %2571 = vpow2.f32 %v2439_v54 }
0x138e   :  { %v2568_v63 = vpop.eup %2567 }
0x138f   :  { %2190 = vrot.lane.b32.xlu1 %v2568_v63, %s2750_s30  ;;  %v2570_v48 = vpop.eup %2569 }
0x1390   :  { %v2102_v33 = vadd.f32 1.0, %v2570_v48  ;;  %v2572_v2 = vpop.eup %2571 }
0x1391   :  { %v2168_v3 = vadd.f32 1.0, %v2572_v2 }
0x1392   :  { %2573 = vrcp.f32 %v2102_v33  ;;  %v2114_v53 = vand.u32 2147483648, %v2102_v33  ;;  %vm2108_vm1 = vweird.f32 %v2102_v33  ;;  %v2112_v7 = vand.u32 2147483647, %v2102_v33 }
0x1393   :  { %2575 = vrcp.f32 %v2168_v3  ;;  %v2180_v46 = vand.u32 2147483648, %v2168_v3  ;;  %vm2174_vm6 = vweird.f32 %v2168_v3  ;;  %v2178_v14 = vand.u32 2147483647, %v2168_v3 }
0x1394   :  { %v2115_v41 = vor.u32 1.1754944e-38, %v2114_v53  ;;  %vm2113_vm3 = vcmp.eq.f32.partialorder %v2112_v7, 8.507059e+37 }
0x1395   :  { %v2181_v8 = vor.u32 1.1754944e-38, %v2180_v46  ;;  %vm2179_vm8 = vcmp.eq.f32.partialorder %v2178_v14, 8.507059e+37 }
0x1398   :  { %v2574_v4 = vpop.eup %2573 }
0x1399   :  { %v2104_v47 = vmul.f32 %v2574_v4, %v2102_v33  ;;  %v2576_v6 = vpop.eup %2575  ;;  %vm2109_vm0 = vweird.f32 %v2574_v4 }
0x139a   :  { %v2170_v49 = vmul.f32 %v2576_v6, %v2168_v3  ;;  %vm2110_vm2 = vmor %vm2108_vm1, %vm2109_vm0  ;;  %vm2175_vm5 = vweird.f32 %v2576_v6 }
0x139b   :  { %v2105_v37 = vsub.f32 1.0, %v2104_v47  ;;  %vm2176_vm7 = vmor %vm2174_vm6, %vm2175_vm5  ;;  %v2278_v47 = vld [vmem:[%s3398_s14 + $0x10] sm:$0xff] }
0x139c   :  { %v2171_v5 = vsub.f32 1.0, %v2170_v49 }
0x139d   :  { %v2106_v55 = vmul.f32 %v2574_v4, %v2105_v37  ;;  %v2276_v37 = vld [vmem:[%s3398_s14] sm:$0xff] }
0x139e   :  { %v2172_v39 = vmul.f32 %v2576_v6, %v2171_v5 }
0x139f   :  { %v2107_v51 = vadd.f32 %v2574_v4, %v2106_v55 }
0x13a0   :  { %v2173_v44 = vadd.f32 %v2576_v6, %v2172_v39 }
0x13a1   :  { %v2111_v40 = vsel %vm2110_vm2, %v2574_v4, %v2107_v51  ;;  %v2279_v4 = vld [vmem:[%s3398_s14 + $0x18] sm:$0xff]  ;;  %v2460_v51 = vld [vmem:[%s3399_s15] ss:$0 sm:$0xff] }
0x13a2   :  { %v2116_v43 = vsel %vm2113_vm3, %v2115_v41, %v2111_v40  ;;  %v2177_v0 = vsel %vm2176_vm7, %v2576_v6, %v2173_v44  ;;  %2301 = vmatpush.msrb.mxu1 %v2279_v4  ;;  %v2277_v6 = vld [vmem:[%s3398_s14 + $0x8] sm:$0xff] }
0x13a3   :  { %v2182_v10 = vsel %vm2179_vm8, %v2181_v8, %v2177_v0  ;;  %v2119_v12 = vmul.f32 %v2116_v43, %v3331_v26 }
0x13a4   :  { %v2188_v17 = vmul.f32 %v2186_v18, %v2182_v10  ;;  %2302 = vmatpush.msrb.mxu1 %v2278_v47 }
0x13a6   :  { %2303 = vmatpush.msrb.mxu1 %v2277_v6 }
0x13a8   :  { %2304 = vmatpush.msrb.mxu1 %v2276_v37 }
0x13fa   :  { %v2122_v42 = vpop.permute.xlu0 %2121 }
0x13fb   :  { %v2124_v45 = vmul.f32 %v2122_v42, %v2116_v43 }
0x13fd   :  { %2126 = vrot.lane.b32.xlu2 %v2124_v45, %s2751_s11 }
0x1401   :  { %v2191_v9 = vpop.permute.xlu1 %2190 }
0x1402   :  { %v2193_v11 = vmul.f32 %v2191_v9, %v2182_v10 }
0x1404   :  { %2195 = vrot.lane.b32.xlu0 %v2193_v11, %s2751_s11 }
0x1457   :  { %v2127_v13 = vpop.permute.xlu2 %2126 }
0x1458   :  { %v2129_v15 = vadd.f32 %v2127_v13, %v2119_v12 }
0x145a   :  { %2577 = vtanh.f32 %v2129_v15 }
0x1460   :  { %v2578_v16 = vpop.eup %2577 }
0x1461   :  { %2132 = vrot.lane.b32.xlu1 %v2578_v16, %s2750_s30 }
0x1476   :  { %v2196_v19 = vpop.permute.xlu0 %2195 }
0x1477   :  { %v2198_v20 = vadd.f32 %v2196_v19, %v2188_v17 }
0x1479   :  { %2579 = vtanh.f32 %v2198_v20 }
0x147f   :  { %v2580_v21 = vpop.eup %2579 }
0x1480   :  { %2201 = vrot.lane.b32.xlu2 %v2580_v21, %s2750_s30 }
0x14d3   :  { %v2133_v23 = vpop.permute.xlu1 %2132 }
0x14d4   :  { %v2135_v24 = vmul.f32 %v2133_v23, %v2116_v43 }
0x14d6   :  { %v2210_v25 = vrot.slane %v2135_v24, 2 }
0x14d8   :  { %2211 = vrot.lane.b32.xlu1 %v2210_v25, %s2750_s30 }
0x14da   :  { %v2202_v26 = vpop.permute.xlu2 %2201 }
0x14db   :  { %v2204_v27 = vmul.f32 %v2202_v26, %v2182_v10 }
0x14dd   :  { %2206 = vrot.lane.b32.xlu0 %v2204_v27, %s2751_s11 }
0x154a   :  { %v2212_v28 = vpop.permute.xlu1 %2211 }
0x154f   :  { %v2207_v29 = vpop.permute.xlu0 %2206 }
0x1550   :  { %v2214_v22 = vsel %vm451_vm4, %v2207_v29, %v2212_v28 }
0x1551   :  { %v2216_v30 = vrot.slane %v2214_v22, 6 }
0x1553   :  { %2440 = vmatmul.msk.f32.vlgmr.msrb.gmra.mxu3 %vm1246_vm9, %v2216_v30 }
0x15d6   :  { %v2236_v31 = vpop.f32.mrf.mxu3 }
0x15d7   :  { %v2237_v34 = vadd.f32 %v3344_v38, %v2236_v31 }
0x15d9   :  { %2581 = vtanh.f32 %v2237_v34  ;;  %v2441_v32 = vmul.f32 -1.442695, %v2237_v34 }
0x15db   :  { %2583 = vpow2.f32 %v2441_v32 }
0x15df   :  { %v2582_v35 = vpop.eup %2581 }
0x15e0   :  { %2261 = vrot.lane.b32.xlu2 %v2582_v35, %s2750_s30 }
0x15e1   :  { %v2584_v36 = vpop.eup %2583 }
0x15e2   :  { %v2242_v50 = vadd.f32 1.0, %v2584_v36 }
0x15e4   :  { %2585 = vrcp.f32 %v2242_v50  ;;  %v2254_v60 = vand.u32 2147483648, %v2242_v50  ;;  %vm2248_vm9 = vweird.f32 %v2242_v50  ;;  %v2252_v61 = vand.u32 2147483647, %v2242_v50 }
0x15e6   :  { %v2255_v62 = vor.u32 1.1754944e-38, %v2254_v60  ;;  %vm2253_vm12 = vcmp.eq.f32.partialorder %v2252_v61, 8.507059e+37 }
0x15ea   :  { %v2586_v52 = vpop.eup %2585 }
0x15eb   :  { %v2244_v56 = vmul.f32 %v2586_v52, %v2242_v50  ;;  %vm2249_vm10 = vweird.f32 %v2586_v52 }
0x15ec   :  { %vm2250_vm11 = vmor %vm2248_vm9, %vm2249_vm10 }
0x15ed   :  { %v2245_v57 = vsub.f32 1.0, %v2244_v56 }
0x15ef   :  { %v2246_v58 = vmul.f32 %v2586_v52, %v2245_v57 }
0x15f1   :  { %v2247_v59 = vadd.f32 %v2586_v52, %v2246_v58 }
0x15f3   :  { %v2251_v38 = vsel %vm2250_vm11, %v2586_v52, %v2247_v59 }
0x15f4   :  { %v2256_v1 = vsel %vm2253_vm12, %v2255_v62, %v2251_v38 }
0x15f5   :  { %v2259_v48 = vmul.f32 %v2256_v1, %v2129_v15 }
0x163a   :  { %v2262_v63 = vpop.permute.xlu2 %2261 }
0x163b   :  { %v2264_v54 = vmul.f32 %v2262_v63, %v2256_v1 }
0x163d   :  { %2266 = vrot.lane.b32.xlu0 %v2264_v54, %s2751_s11 }
0x16af   :  { %v2267_v33 = vpop.permute.xlu0 %2266 }
0x16b0   :  { %v2269_v2 = vadd.f32 %v2267_v33, %v2259_v48 }
0x16b2   :  { %2587 = vtanh.f32 %v2269_v2 }
0x16b8   :  { %v2588_v3 = vpop.eup %2587 }
0x16b9   :  { %2272 = vrot.lane.b32.xlu1 %v2588_v3, %s2750_s30 }
0x172b   :  { %v2273_v49 = vpop.permute.xlu1 %2272 }
0x172c   :  { %v2275_v55 = vmul.f32 %v2273_v49, %v2256_v1 }
0x172e   :  { %2285 = vrot.lane.b32.xlu2 %v2275_v55, %s2751_s11 }
0x1788   :  { %v2286_v5 = vpop.permute.xlu2 %2285 }
0x1789   :  { %2442 = vmatmul.msk.f32.vlgmr.msrb.gmra.mxu1 %vm451_vm4, %v2286_v5 }
0x1806   :  { %v2306_v53 = vpop.f32.mrf.mxu1 }
0x1807   :  { %v2307_v7 = vadd.f32 %v2460_v51, %v2306_v53 }
0x1809   :  { %2310 = vst.msk [vmem:[#allocation11] sm:$0x3] %vm2309_vm13, %v2307_v7 }
0x180a   :  { %2321 = dma.vmem_to_hbm [thread:$0]  %s2317_s9, 32, %s2319_s27, [#allocation4]  }
0x180b   :  { %2740 = dma.done.wait [#allocation4], 32  }
0x180c   :  { %2741 = vsyncadd [#allocation4], 4294967264 }
0x180d   :  { %2326 = vsyncpa [#allocation3], 1 }
0x180e   :  { %2327 = vsyncpa [#allocation6], 1 }
0x180f   :  { %2328 = vsyncpa [#allocation9], 1 }
0x1810   :  { %2329 = vsyncpa [#allocation4], 1 }

</bundles_post_ra>
